<compile_context>
chip_gen: v7x
topology: tpu7x:2x2x1
jax: 0.10.0
libtpu: 0.0.40
codegen_flags: <defaults>
</compile_context>

<pallas_src>
import numpy as np
import jax
import jax.numpy as jnp
from jax import lax
from jax.experimental import pallas as pl
from jax.experimental.pallas import tpu as pltpu

CONV_OUT_CH = 16
CONV_HW = 8                                   # 10 - 2 (valid 3x3 conv)
CONV_FLAT = CONV_OUT_CH * CONV_HW * CONV_HW   # 1024
HIDDEN = 128
OUT_PAD = 128                                 # lane-dense padded logits width


def _round_up(x, m):
    return (x + m - 1) // m * m


def _cdiv(a, b):
    return (a + b - 1) // b


# -----------------------------------------------------------------------------
# Fused kernel: conv(as dense matmul) + ReLU + FC1 + ReLU + FC2
# -----------------------------------------------------------------------------
def _minatar_kernel(x_ref, wc_ref, bc_ref, w1_ref, b1_ref, w2_ref, b2_ref,
                    out_ref):
    # x_ref  : [bt, Kp] bf16      (one batch tile; Kp = round_up(C*100, 128))
    # wc_ref : [Kp, 1024] bf16    (conv as dense matmul; zero rows in K pad)
    # bc_ref : [1, 1024] f32      (conv bias expanded to flatten order)
    # w1_ref : [1024, 128] bf16   (FC1 weight, pre-transposed)
    # b1_ref : [1, 128] f32
    # w2_ref : [128, 128] bf16    (head weight, action dim zero-padded to 128)
    # b2_ref : [1, 128] f32       (head bias, zero-padded)
    # out_ref: [bt, 128] f32      (lane-dense; wrapper slices [:, :action_no])

    # Conv (+bias) + ReLU; already in PyTorch channel-major flatten order.
    c = jnp.dot(x_ref[...], wc_ref[...], preferred_element_type=jnp.float32)
    c = jnp.maximum(c + bc_ref[...], 0.0)

    # FC1 + ReLU.
    h = jnp.dot(c.astype(jnp.bfloat16), w1_ref[...],
                preferred_element_type=jnp.float32)
    h = jnp.maximum(h + b1_ref[...], 0.0)

    # FC2 (head).
    q = jnp.dot(h.astype(jnp.bfloat16), w2_ref[...],
                preferred_element_type=jnp.float32)
    out_ref[...] = q + b2_ref[...]


# -----------------------------------------------------------------------------
# Host-side, one-time parameter transformation (PyTorch layout -> kernel layout)
# -----------------------------------------------------------------------------
def build_kernel_params(conv_w, conv_b, fc1_w, fc1_b, head_w, head_b,
                        *, compute_dtype=jnp.bfloat16):
    """conv_w [16,C,3,3], conv_b [16], fc1_w [128,1024], fc1_b [128],
    head_w [A,128], head_b [A]  (PyTorch conventions)."""
    oc, cin, kh, kw = conv_w.shape
    assert (oc, kh, kw) == (CONV_OUT_CH, 3, 3)
    k_in = cin * 10 * 10
    k_pad = _round_up(k_in, 128)        # e.g. 400 -> 512 (lane-dense K)

    # Dense conv matrix [C*100, 1024]: identity basis through the exact conv +
    # channel-major flatten -> order matches nn.Flatten(NCHW) by construction.
    eye = jnp.eye(k_in, dtype=jnp.float32).reshape(k_in, cin, 10, 10)
    wc_big = lax.conv_general_dilated(
        eye, conv_w.astype(jnp.float32), window_strides=(1, 1),
        padding="VALID", dimension_numbers=("NCHW", "OIHW", "NCHW"))
    wc_big = wc_big.reshape(k_in, CONV_FLAT)
    wc_big = jnp.pad(wc_big, ((0, k_pad - k_in), (0, 0)))   # zero K-pad rows
    bc_big = jnp.repeat(conv_b.astype(jnp.float32), CONV_HW * CONV_HW)

    action_no = head_w.shape[0]
    assert action_no <= OUT_PAD
    w2 = jnp.zeros((HIDDEN, OUT_PAD), jnp.float32)
    w2 = w2.at[:, :action_no].set(head_w.astype(jnp.float32).T)
    b2 = jnp.zeros((OUT_PAD,), jnp.float32).at[:action_no].set(
        head_b.astype(jnp.float32))

    return dict(
        wc=wc_big.astype(compute_dtype),                       # [Kp, 1024]
        bc=bc_big.reshape(1, CONV_FLAT),                       # [1, 1024] f32
        w1=fc1_w.astype(jnp.float32).T.astype(compute_dtype),  # [1024, 128]
        b1=fc1_b.astype(jnp.float32).reshape(1, HIDDEN),       # [1, 128]  f32
        w2=w2.astype(compute_dtype),                           # [128, 128]
        b2=b2.reshape(1, OUT_PAD),                             # [1, 128]  f32
    )


# -----------------------------------------------------------------------------
# Wrapper
# -----------------------------------------------------------------------------
def minatar_forward(x, params, action_no, *, block_b=1024):
    """x: [B, C, 10, 10] (or [B, 1, C, 10, 10])  ->  Q-values [B, action_no]."""
    if x.ndim == 5:                       # mirrors the PyTorch squeeze(1)
        x = jnp.squeeze(x, axis=1)
    B, C, H, W = x.shape
    assert (H, W) == (10, 10)
    k_in = C * 100
    k_pad = params["wc"].shape[0]
    assert k_pad >= k_in

    # Batch tiling: bf16 sublane packing => bt multiple of 16; derive bt from
    # the tile count so padding is at most ~one sublane group per tile; force
    # >=2 grid steps when B >= 32 so both v7x TensorCores get work.
    n_tiles = _cdiv(B, block_b)
    if B >= 32:
        n_tiles = max(n_tiles, 2)
    bt = _round_up(_cdiv(B, n_tiles), 16)
    Bp = bt * n_tiles

    # Stream x as bf16 (exact for 0/1 MinAtar planes); reshape is free (NCHW
    # contiguous), single pad covers both the batch tail and the K lane pad.
    x_flat = x.reshape(B, k_in).astype(jnp.bfloat16)
    if Bp != B or k_pad != k_in:
        x_flat = jnp.pad(x_flat, ((0, Bp - B), (0, k_pad - k_in)))

    out = pl.pallas_call(
        _minatar_kernel,
        out_shape=jax.ShapeDtypeStruct((Bp, OUT_PAD), jnp.float32),
        grid=(n_tiles,),
        in_specs=[
            pl.BlockSpec((bt, k_pad), lambda i: (i, 0)),           # x tile
            pl.BlockSpec((k_pad, CONV_FLAT), lambda i: (0, 0)),    # resident W
            pl.BlockSpec((1, CONV_FLAT), lambda i: (0, 0)),
            pl.BlockSpec((CONV_FLAT, HIDDEN), lambda i: (0, 0)),
            pl.BlockSpec((1, HIDDEN), lambda i: (0, 0)),
            pl.BlockSpec((HIDDEN, OUT_PAD), lambda i: (0, 0)),
            pl.BlockSpec((1, OUT_PAD), lambda i: (0, 0)),
        ],
        out_specs=pl.BlockSpec((bt, OUT_PAD), lambda i: (i, 0)),   # lane-dense
        compiler_params=pltpu.CompilerParams(
            dimension_semantics=("parallel",),
            vmem_limit_bytes=32 * 1024 * 1024,     # actual footprint ~13 MB
        ),
    )(x_flat, params["wc"], params["bc"], params["w1"], params["b1"],
      params["w2"], params["b2"])

    return out[:B, :action_no]


# -----------------------------------------------------------------------------
# Pure-JAX reference (mirrors the PyTorch forward, f32 throughout)
# -----------------------------------------------------------------------------
def minatar_reference(x, conv_w, conv_b, fc1_w, fc1_b, head_w, head_b):
    x = x.astype(jnp.float32)
    y = lax.conv_general_dilated(
        x, conv_w, window_strides=(1, 1), padding="VALID",
        dimension_numbers=("NCHW", "OIHW", "NCHW"))
    y = jnp.maximum(y + conv_b[None, :, None, None], 0.0)
    f = y.reshape(x.shape[0], -1)                 # nn.Flatten (channel-major)
    h = jnp.maximum(f @ fc1_w.T + fc1_b, 0.0)
    return h @ head_w.T + head_b

# TODO(synk): mode='line'/'bezier' (alpha-blended subspace weights) and
# support!=None (distributional softmax head) are not implemented; the module
# defaults used here are mode='point', support=None.


if __name__ == "__main__":
    key = jax.random.PRNGKey(0)
    B, C, A = 6, 4, 6
    ks = jax.random.split(key, 7)

    # MinAtar observations are sparse binary planes.
    x = (jax.random.uniform(ks[0], (B, C, 10, 10)) < 0.15).astype(jnp.float32)
    conv_w = jax.random.normal(ks[1], (16, C, 3, 3), jnp.float32) * 0.2
    conv_b = jax.random.normal(ks[2], (16,), jnp.float32) * 0.05
    fc1_w = jax.random.normal(ks[3], (HIDDEN, CONV_FLAT), jnp.float32) * 0.04
    fc1_b = jax.random.normal(ks[4], (HIDDEN,), jnp.float32) * 0.05
    head_w = jax.random.normal(ks[5], (A, HIDDEN), jnp.float32) * 0.1
    head_b = jax.random.normal(ks[6], (A,), jnp.float32) * 0.05

    params = build_kernel_params(conv_w, conv_b, fc1_w, fc1_b, head_w, head_b)

    fwd = jax.jit(lambda xx, pp: minatar_forward(xx, pp, A))
    out = jax.block_until_ready(fwd(x, params))

    ref = jax.block_until_ready(
        minatar_reference(x, conv_w, conv_b, fc1_w, fc1_b, head_w, head_b))

    assert out.shape == (B, A), out.shape
    err = float(jnp.max(jnp.abs(out - ref)))
    assert np.isfinite(err) and err < 5e-2, f"max abs error vs reference: {err}"
    print("KERNEL_OK")
</pallas_src>

<mosaic_0001>
module attributes {stable_mosaic.version = 11 : i64} {
  func.func @_minatar_kernel(%arg0: i32, %arg1: memref<16x512xbf16, #tpu.memory_space<vmem>>, %arg2: memref<512x1024xbf16, #tpu.memory_space<vmem>>, %arg3: memref<1x1024xf32, #tpu.memory_space<vmem>>, %arg4: memref<1024x128xbf16, #tpu.memory_space<vmem>>, %arg5: memref<1x128xf32, #tpu.memory_space<vmem>>, %arg6: memref<128x128xbf16, #tpu.memory_space<vmem>>, %arg7: memref<1x128xf32, #tpu.memory_space<vmem>>, %arg8: memref<16x128xf32, #tpu.memory_space<vmem>>) attributes {dimension_semantics = [#tpu.dimension_semantics<parallel>], iteration_bounds = array<i64: 1>, scalar_prefetch = 0 : i64, scratch_operands = 0 : i64, tpu.core_type = #tpu.core_type<tc>, window_params = [{transform_indices = @transform_0, window_bounds = array<i64: 16, 512>}, {pipeline_mode = #tpu.pipeline_mode<synchronous>, transform_indices = @transform_1, window_bounds = array<i64: 512, 1024>}, {pipeline_mode = #tpu.pipeline_mode<synchronous>, transform_indices = @transform_2, window_bounds = array<i64: 1, 1024>}, {pipeline_mode = #tpu.pipeline_mode<synchronous>, transform_indices = @transform_3, window_bounds = array<i64: 1024, 128>}, {pipeline_mode = #tpu.pipeline_mode<synchronous>, transform_indices = @transform_4, window_bounds = array<i64: 1, 128>}, {pipeline_mode = #tpu.pipeline_mode<synchronous>, transform_indices = @transform_5, window_bounds = array<i64: 128, 128>}, {pipeline_mode = #tpu.pipeline_mode<synchronous>, transform_indices = @transform_6, window_bounds = array<i64: 1, 128>}, {transform_indices = @transform_7, window_bounds = array<i64: 16, 128>}]} {
    %c0 = arith.constant 0 : index
    %c0_0 = arith.constant 0 : index
    %0 = vector.load %arg1[%c0, %c0_0] : memref<16x512xbf16, #tpu.memory_space<vmem>>, vector<16x512xbf16>
    %c0_1 = arith.constant 0 : index
    %c0_2 = arith.constant 0 : index
    %1 = vector.load %arg2[%c0_1, %c0_2] : memref<512x1024xbf16, #tpu.memory_space<vmem>>, vector<512x1024xbf16>
    %cst = arith.constant dense<0.000000e+00> : vector<16x1024xf32>
    %2 = tpu.matmul %0, %1, %cst {dimension_numbers = #tpu.dot_dimension_numbers<[1], [0], [0], [1], [0, 0, 1, 1], [], []>} : vector<16x512xbf16>, vector<512x1024xbf16>, vector<16x1024xf32> -> vector<16x1024xf32>
    %c0_3 = arith.constant 0 : index
    %c0_4 = arith.constant 0 : index
    %3 = vector.load %arg3[%c0_3, %c0_4] : memref<1x1024xf32, #tpu.memory_space<vmem>>, vector<1x1024xf32>
    %4 = vector.broadcast %3 : vector<1x1024xf32> to vector<16x1024xf32>
    %5 = arith.addf %2, %4 : vector<16x1024xf32>
    %cst_5 = arith.constant 0.000000e+00 : f32
    %6 = vector.broadcast %cst_5 : f32 to vector<16x1024xf32>
    %7 = arith.maximumf %5, %6 : vector<16x1024xf32>
    %8 = arith.truncf %7 : vector<16x1024xf32> to vector<16x1024xbf16>
    %c0_6 = arith.constant 0 : index
    %c0_7 = arith.constant 0 : index
    %9 = vector.load %arg4[%c0_6, %c0_7] : memref<1024x128xbf16, #tpu.memory_space<vmem>>, vector<1024x128xbf16>
    %cst_8 = arith.constant dense<0.000000e+00> : vector<16x128xf32>
    %10 = tpu.matmul %8, %9, %cst_8 {dimension_numbers = #tpu.dot_dimension_numbers<[1], [0], [0], [1], [0, 0, 1, 1], [], []>} : vector<16x1024xbf16>, vector<1024x128xbf16>, vector<16x128xf32> -> vector<16x128xf32>
    %c0_9 = arith.constant 0 : index
    %c0_10 = arith.constant 0 : index
    %11 = vector.load %arg5[%c0_9, %c0_10] : memref<1x128xf32, #tpu.memory_space<vmem>>, vector<1x128xf32>
    %12 = vector.broadcast %11 : vector<1x128xf32> to vector<16x128xf32>
    %13 = arith.addf %10, %12 : vector<16x128xf32>
    %cst_11 = arith.constant 0.000000e+00 : f32
    %14 = vector.broadcast %cst_11 : f32 to vector<16x128xf32>
    %15 = arith.maximumf %13, %14 : vector<16x128xf32>
    %16 = arith.truncf %15 : vector<16x128xf32> to vector<16x128xbf16>
    %c0_12 = arith.constant 0 : index
    %c0_13 = arith.constant 0 : index
    %17 = vector.load %arg6[%c0_12, %c0_13] : memref<128x128xbf16, #tpu.memory_space<vmem>>, vector<128x128xbf16>
    %cst_14 = arith.constant dense<0.000000e+00> : vector<16x128xf32>
    %18 = tpu.matmul %16, %17, %cst_14 {dimension_numbers = #tpu.dot_dimension_numbers<[1], [0], [0], [1], [0, 0, 1, 1], [], []>} : vector<16x128xbf16>, vector<128x128xbf16>, vector<16x128xf32> -> vector<16x128xf32>
    %c0_15 = arith.constant 0 : index
    %c0_16 = arith.constant 0 : index
    %19 = vector.load %arg7[%c0_15, %c0_16] : memref<1x128xf32, #tpu.memory_space<vmem>>, vector<1x128xf32>
    %20 = vector.broadcast %19 : vector<1x128xf32> to vector<16x128xf32>
    %21 = arith.addf %18, %20 : vector<16x128xf32>
    %c0_17 = arith.constant 0 : index
    %c0_18 = arith.constant 0 : index
    %22 = vector.load %arg8[%c0_17, %c0_18] : memref<16x128xf32, #tpu.memory_space<vmem>>, vector<16x128xf32>
    tpu.vector_store %arg8[%c0_17, %c0_18], %21 {strides = array<i32>} : memref<16x128xf32, #tpu.memory_space<vmem>>, vector<16x128xf32>,
    return
  }
  func.func @transform_0(%arg0: i32) -> (i32, i32) {
    %c0_i32 = arith.constant 0 : i32
    %c0_i32_0 = arith.constant 0 : i32
    return %arg0, %c0_i32 : i32, i32
  }
  func.func @transform_1(%arg0: i32) -> (i32, i32) {
    %c0_i32 = arith.constant 0 : i32
    %c0_i32_0 = arith.constant 0 : i32
    %c0_i32_1 = arith.constant 0 : i32
    return %c0_i32, %c0_i32_0 : i32, i32
  }
  func.func @transform_2(%arg0: i32) -> (i32, i32) {
    %c0_i32 = arith.constant 0 : i32
    %c0_i32_0 = arith.constant 0 : i32
    %c0_i32_1 = arith.constant 0 : i32
    return %c0_i32, %c0_i32_0 : i32, i32
  }
  func.func @transform_3(%arg0: i32) -> (i32, i32) {
    %c0_i32 = arith.constant 0 : i32
    %c0_i32_0 = arith.constant 0 : i32
    %c0_i32_1 = arith.constant 0 : i32
    return %c0_i32, %c0_i32_0 : i32, i32
  }
  func.func @transform_4(%arg0: i32) -> (i32, i32) {
    %c0_i32 = arith.constant 0 : i32
    %c0_i32_0 = arith.constant 0 : i32
    %c0_i32_1 = arith.constant 0 : i32
    return %c0_i32, %c0_i32_0 : i32, i32
  }
  func.func @transform_5(%arg0: i32) -> (i32, i32) {
    %c0_i32 = arith.constant 0 : i32
    %c0_i32_0 = arith.constant 0 : i32
    %c0_i32_1 = arith.constant 0 : i32
    return %c0_i32, %c0_i32_0 : i32, i32
  }
  func.func @transform_6(%arg0: i32) -> (i32, i32) {
    %c0_i32 = arith.constant 0 : i32
    %c0_i32_0 = arith.constant 0 : i32
    %c0_i32_1 = arith.constant 0 : i32
    return %c0_i32, %c0_i32_0 : i32, i32
  }
  func.func @transform_7(%arg0: i32) -> (i32, i32) {
    %c0_i32 = arith.constant 0 : i32
    %c0_i32_0 = arith.constant 0 : i32
    return %arg0, %c0_i32 : i32, i32
  }
}

</mosaic_0001>

<bundles_post_ra>
// kernel: _lambda_.1
= control target key start
LH: loop header
LB: loop body
LE: loop exit
PB: predicated region body
PF: predicated region fallthrough
CT: control target
= control target key end

     0   :  { %12 = vsyncpa [#allocation3], 0  ;;  %s3408_s24 = smov [#allocation2]   ;;  %s3755_s0 = inlined_call_operand.vmem [shape: bf16[16,512], index: 0, kind: input, shape index: {}]   ;;  %s3756_s1 = inlined_call_operand.hbm [shape: bf16[512,1024], index: 1, kind: input, shape index: {}]   ;;  %s3757_s2 = inlined_call_operand.vmem [shape: f32[1,1024], index: 2, kind: input, shape index: {}]   ;;  %s3758_s3 = inlined_call_operand.vmem [shape: bf16[1024,128], index: 3, kind: input, shape index: {}]   ;;  %s3759_s4 = inlined_call_operand.vmem [shape: f32[1,128], index: 4, kind: input, shape index: {}]   ;;  %s3760_s5 = inlined_call_operand.vmem [shape: bf16[128,128], index: 5, kind: input, shape index: {}]   ;;  %s3761_s6 = inlined_call_operand.vmem [shape: f32[1,128], index: 6, kind: input, shape index: {}]   ;;  %s3762_s7 = inlined_call_operand.vmem [shape: f32[16,128], index: 7, kind: output, shape index: {}]  }
   0x1   :  { %s20_s25 = sshll.u32 %s3408_s24, 4  ;;  %s3384_s28 = scalar_lea.hbm %s3756_s1, 32768  ;;  %s21_s25 = int_to_ptr.vmem [resolvable:$true] %s20_s25 }
   0x2   :  { %p3385_p0 = scmp.ne.s32.totalorder %s3756_s1, %s3384_s28  ;;  %p3388_p1 = scmp.lt.u32.totalorder %s3384_s28, %s3756_s1 }
   0x4   :  { %p3390_p2 = pnand %p3388_p1, %p3385_p0 }
   0x6   :  { %3393 = shalt.err (!%p3390_p2)
}
   0x7   :  { %s3394_s10 = scalar_lea.vmem %s21_s25, 32768  ;;  %p3399_p4 = scmp.lt.s32.totalorder %s21_s25, %s21_s25 }
   0x8   :  { %p3395_p3 = scmp.ne.s32.totalorder %s21_s25, %s3394_s10  ;;  %p3400_p5 = scmp.lt.s32.totalorder %s3394_s10, %s3394_s10 }
   0xa   :  { %p3401_p6 = por %p3400_p5, %p3399_p4 }
   0xc   :  { %p3402_p7 = pnand %p3401_p6, %p3395_p3 }
   0xe   :  { %3405 = shalt.err (!%p3402_p7)
}
   0xf   :  { %s3409_s11 = smov 512   ;;  %s3410_s12 = smov 32  }
  0x10   :  { %26 = dma.hbm_to_vmem [thread:$0]  %s3756_s1, 32768, %s21_s25, [#allocation3], %s3409_s11, %s3409_s11, %s3410_s12  }
  0x11   :  { %3406 = dma.done.wait [#allocation3], 32768  }
  0x12   :  { %3407 = vsyncadd [#allocation3], 4294934528  ;;  %v45_v0 = vld [vmem:[#allocation2] sm:$0xff]  ;;  %v46_v2 = vld [vmem:[#allocation2 + $0x8] sm:$0xff]  ;;  %vm3412_vm0 = vmmov 0  }
  0x13   :  { %v49_v1 = vld [vmem:[#allocation2 + $0x20] sm:$0xff]  ;;  %v50_v4 = vld [vmem:[#allocation2 + $0x28] sm:$0xff] }
  0x14   :  { %v2821_v3 = vcombine.high %v45_v0, %v49_v1  ;;  %v2820_v5 = vcombine.low %v45_v0, %v49_v1  ;;  %v53_v6 = vld [vmem:[#allocation2 + $0x40] sm:$0xff]  ;;  %v2823_v8 = vcombine.high %v46_v2, %v50_v4  ;;  %v2822_v9 = vcombine.low %v46_v2, %v50_v4  ;;  %v54_v11 = vld [vmem:[#allocation2 + $0x48] sm:$0xff] }
  0x15   :  { %v57_v7 = vld [vmem:[#allocation2 + $0x60] sm:$0xff]  ;;  %v58_v12 = vld [vmem:[#allocation2 + $0x68] sm:$0xff] }
  0x16   :  { %v2829_v10 = vcombine.high %v53_v6, %v57_v7  ;;  %v61_v13 = vld [vmem:[#allocation2 + $0x80] sm:$0xff]  ;;  %1643 = vmatprep.subr.bf16.mxu0 %v2821_v3  ;;  %v2831_v14 = vcombine.high %v54_v11, %v58_v12  ;;  %v62_v16 = vld [vmem:[#allocation2 + $0x88] sm:$0xff]  ;;  %1729 = vmatprep.subr.bf16.mxu1 %v2823_v8  ;;  %v2828_v18 = vcombine.low %v53_v6, %v57_v7 }
  0x17   :  { %v65_v15 = vld [vmem:[#allocation2 + $0xa0] sm:$0xff]  ;;  %v66_v17 = vld [vmem:[#allocation2 + $0xa8] sm:$0xff]  ;;  %1644 = vmatpush1.bf16.msra.mxu0 %v2820_v5  ;;  %1730 = vmatpush1.bf16.msra.mxu1 %v2822_v9  ;;  %v2830_v19 = vcombine.low %v54_v11, %v58_v12 }
  0x18   :  { %1645 = vmatprep.subr.bf16.mxu0 %v2829_v10  ;;  %v2837_v20 = vcombine.high %v61_v13, %v65_v15  ;;  %1731 = vmatprep.subr.bf16.mxu1 %v2831_v14  ;;  %v2839_v21 = vcombine.high %v62_v16, %v66_v17  ;;  %v69_v22 = vld [vmem:[#allocation2 + $0xc0] sm:$0xff]  ;;  %v70_v24 = vld [vmem:[#allocation2 + $0xc8] sm:$0xff]  ;;  %v2836_v26 = vcombine.low %v61_v13, %v65_v15 }
  0x19   :  { %v73_v23 = vld [vmem:[#allocation2 + $0xe0] sm:$0xff]  ;;  %v74_v25 = vld [vmem:[#allocation2 + $0xe8] sm:$0xff]  ;;  %v2838_v27 = vcombine.low %v62_v16, %v66_v17 }
  0x1a   :  { %v2845_v28 = vcombine.high %v69_v22, %v73_v23  ;;  %v2847_v29 = vcombine.high %v70_v24, %v74_v25  ;;  %v77_v30 = vld [vmem:[#allocation2 + $0x100] sm:$0xff]  ;;  %v78_v32 = vld [vmem:[#allocation2 + $0x108] sm:$0xff]  ;;  %v2844_v34 = vcombine.low %v69_v22, %v73_v23  ;;  %v2846_v35 = vcombine.low %v70_v24, %v74_v25 }
  0x1b   :  { %1646 = vmatpush1.bf16.msra.mxu0 %v2828_v18  ;;  %1732 = vmatpush1.bf16.msra.mxu1 %v2830_v19  ;;  %v81_v31 = vld [vmem:[#allocation2 + $0x120] sm:$0xff]  ;;  %v82_v33 = vld [vmem:[#allocation2 + $0x128] sm:$0xff] }
  0x1c   :  { %1647 = vmatprep.subr.bf16.mxu0 %v2837_v20  ;;  %1733 = vmatprep.subr.bf16.mxu1 %v2839_v21  ;;  %v2853_v36 = vcombine.high %v77_v30, %v81_v31  ;;  %v2855_v37 = vcombine.high %v78_v32, %v82_v33  ;;  %v85_v38 = vld [vmem:[#allocation2 + $0x140] sm:$0xff]  ;;  %v86_v40 = vld [vmem:[#allocation2 + $0x148] sm:$0xff]  ;;  %v2852_v42 = vcombine.low %v77_v30, %v81_v31 }
  0x1d   :  { %v89_v39 = vld [vmem:[#allocation2 + $0x160] sm:$0xff]  ;;  %v90_v41 = vld [vmem:[#allocation2 + $0x168] sm:$0xff]  ;;  %v2854_v43 = vcombine.low %v78_v32, %v82_v33 }
  0x1e   :  { %v2861_v44 = vcombine.high %v85_v38, %v89_v39  ;;  %v2863_v45 = vcombine.high %v86_v40, %v90_v41  ;;  %v93_v46 = vld [vmem:[#allocation2 + $0x180] sm:$0xff]  ;;  %v94_v48 = vld [vmem:[#allocation2 + $0x188] sm:$0xff]  ;;  %v2860_v50 = vcombine.low %v85_v38, %v89_v39  ;;  %v2862_v51 = vcombine.low %v86_v40, %v90_v41 }
  0x1f   :  { %1648 = vmatpush1.bf16.msra.mxu0 %v2836_v26  ;;  %1734 = vmatpush1.bf16.msra.mxu1 %v2838_v27  ;;  %v97_v47 = vld [vmem:[#allocation2 + $0x1a0] sm:$0xff]  ;;  %v98_v49 = vld [vmem:[#allocation2 + $0x1a8] sm:$0xff] }
  0x20   :  { %1649 = vmatprep.subr.bf16.mxu0 %v2845_v28  ;;  %1735 = vmatprep.subr.bf16.mxu1 %v2847_v29  ;;  %v2869_v52 = vcombine.high %v93_v46, %v97_v47  ;;  %v2871_v53 = vcombine.high %v94_v48, %v98_v49  ;;  %v101_v54 = vld [vmem:[#allocation2 + $0x1c0] sm:$0xff]  ;;  %v102_v57 = vld [vmem:[#allocation2 + $0x1c8] sm:$0xff]  ;;  %v2868_v59 = vcombine.low %v93_v46, %v97_v47 }
  0x21   :  { %v105_v55 = vld [vmem:[#allocation2 + $0x1e0] sm:$0xff]  ;;  %v106_v58 = vld [vmem:[#allocation2 + $0x1e8] sm:$0xff]  ;;  %v2870_v60 = vcombine.low %v94_v48, %v98_v49 }
  0x22   :  { %v3468_v56 = vld [vmem:[%s3755_s0 + $0x4] ss:$16 sps:$4 sm:$0xff]   ;;  %v2877_v61 = vcombine.high %v101_v54, %v105_v55  ;;  %v2879_v62 = vcombine.high %v102_v57, %v106_v58  ;;  %v110_v1 = vld [vmem:[#allocation2 + $0x208] sm:$0xff]  ;;  %v2876_v3 = vcombine.low %v101_v54, %v105_v55  ;;  %v2878_v4 = vcombine.low %v102_v57, %v106_v58 }
  0x23   :  { %1650 = vmatpush1.bf16.msra.mxu0 %v2844_v34  ;;  %1736 = vmatpush1.bf16.msra.mxu1 %v2846_v35  ;;  %v109_v63 = vld [vmem:[#allocation2 + $0x200] sm:$0xff]  ;;  %v114_v2 = vld [vmem:[#allocation2 + $0x228] sm:$0xff] }
  0x24   :  { %1651 = vmatprep.subr.bf16.mxu0 %v2853_v36  ;;  %1737 = vmatprep.subr.bf16.mxu1 %v2855_v37  ;;  %v113_v0 = vld [vmem:[#allocation2 + $0x220] sm:$0xff]  ;;  %v2887_v6 = vcombine.high %v110_v1, %v114_v2  ;;  %v118_v9 = vld [vmem:[#allocation2 + $0x248] sm:$0xff]  ;;  %v2886_v12 = vcombine.low %v110_v1, %v114_v2 }
  0x25   :  { %1675 = vmatprep.mubr.bf16.mxu0 %v3468_v56  ;;  %1761 = vmatprep.mubr.bf16.mxu1 %v3468_v56  ;;  %v2885_v5 = vcombine.high %v109_v63, %v113_v0  ;;  %v117_v7 = vld [vmem:[#allocation2 + $0x240] sm:$0xff]  ;;  %v122_v10 = vld [vmem:[#allocation2 + $0x268] sm:$0xff]  ;;  %v2884_v11 = vcombine.low %v109_v63, %v113_v0 }
  0x26   :  { %v121_v8 = vld [vmem:[#allocation2 + $0x260] sm:$0xff]  ;;  %v2895_v14 = vcombine.high %v118_v9, %v122_v10  ;;  %v126_v17 = vld [vmem:[#allocation2 + $0x288] sm:$0xff]  ;;  %v2894_v20 = vcombine.low %v118_v9, %v122_v10 }
  0x27   :  { %1652 = vmatpush1.bf16.msra.mxu0 %v2852_v42  ;;  %1738 = vmatpush1.bf16.msra.mxu1 %v2854_v43  ;;  %v2893_v13 = vcombine.high %v117_v7, %v121_v8  ;;  %v125_v15 = vld [vmem:[#allocation2 + $0x280] sm:$0xff]  ;;  %v130_v18 = vld [vmem:[#allocation2 + $0x2a8] sm:$0xff]  ;;  %v2892_v19 = vcombine.low %v117_v7, %v121_v8 }
  0x28   :  { %1653 = vmatprep.subr.bf16.mxu0 %v2861_v44  ;;  %1739 = vmatprep.subr.bf16.mxu1 %v2863_v45  ;;  %v129_v16 = vld [vmem:[#allocation2 + $0x2a0] sm:$0xff]  ;;  %v2903_v22 = vcombine.high %v126_v17, %v130_v18  ;;  %v134_v25 = vld [vmem:[#allocation2 + $0x2c8] sm:$0xff]  ;;  %v2902_v28 = vcombine.low %v126_v17, %v130_v18 }
  0x29   :  { %v2901_v21 = vcombine.high %v125_v15, %v129_v16  ;;  %v133_v23 = vld [vmem:[#allocation2 + $0x2c0] sm:$0xff]  ;;  %v138_v26 = vld [vmem:[#allocation2 + $0x2e8] sm:$0xff]  ;;  %v2900_v27 = vcombine.low %v125_v15, %v129_v16 }
  0x2a   :  { %v137_v24 = vld [vmem:[#allocation2 + $0x2e0] sm:$0xff]  ;;  %v2911_v30 = vcombine.high %v134_v25, %v138_v26  ;;  %v142_v33 = vld [vmem:[#allocation2 + $0x308] sm:$0xff]  ;;  %v2910_v36 = vcombine.low %v134_v25, %v138_v26 }
  0x2b   :  { %1654 = vmatpush1.bf16.msra.mxu0 %v2860_v50  ;;  %1740 = vmatpush1.bf16.msra.mxu1 %v2862_v51  ;;  %v2909_v29 = vcombine.high %v133_v23, %v137_v24  ;;  %v141_v31 = vld [vmem:[#allocation2 + $0x300] sm:$0xff]  ;;  %v146_v34 = vld [vmem:[#allocation2 + $0x328] sm:$0xff]  ;;  %v2908_v35 = vcombine.low %v133_v23, %v137_v24 }
  0x2c   :  { %1655 = vmatprep.subr.bf16.mxu0 %v2869_v52  ;;  %1741 = vmatprep.subr.bf16.mxu1 %v2871_v53  ;;  %v145_v32 = vld [vmem:[#allocation2 + $0x320] sm:$0xff]  ;;  %v2919_v38 = vcombine.high %v142_v33, %v146_v34  ;;  %v150_v41 = vld [vmem:[#allocation2 + $0x348] sm:$0xff]  ;;  %v2918_v44 = vcombine.low %v142_v33, %v146_v34 }
  0x2d   :  { %v2917_v37 = vcombine.high %v141_v31, %v145_v32  ;;  %v149_v39 = vld [vmem:[#allocation2 + $0x340] sm:$0xff]  ;;  %v154_v42 = vld [vmem:[#allocation2 + $0x368] sm:$0xff]  ;;  %v2916_v43 = vcombine.low %v141_v31, %v145_v32 }
  0x2e   :  { %v153_v40 = vld [vmem:[#allocation2 + $0x360] sm:$0xff]  ;;  %v2927_v46 = vcombine.high %v150_v41, %v154_v42  ;;  %v158_v49 = vld [vmem:[#allocation2 + $0x388] sm:$0xff]  ;;  %v2926_v52 = vcombine.low %v150_v41, %v154_v42 }
  0x2f   :  { %1656 = vmatpush1.bf16.msra.mxu0 %v2868_v59  ;;  %1742 = vmatpush1.bf16.msra.mxu1 %v2870_v60  ;;  %v2925_v45 = vcombine.high %v149_v39, %v153_v40  ;;  %v157_v47 = vld [vmem:[#allocation2 + $0x380] sm:$0xff]  ;;  %v162_v50 = vld [vmem:[#allocation2 + $0x3a8] sm:$0xff]  ;;  %v2924_v51 = vcombine.low %v149_v39, %v153_v40 }
  0x30   :  { %1657 = vmatprep.subr.bf16.mxu0 %v2877_v61  ;;  %1743 = vmatprep.subr.bf16.mxu1 %v2879_v62  ;;  %v161_v48 = vld [vmem:[#allocation2 + $0x3a0] sm:$0xff]  ;;  %v2935_v54 = vcombine.high %v158_v49, %v162_v50  ;;  %v166_v58 = vld [vmem:[#allocation2 + $0x3c8] sm:$0xff]  ;;  %v2934_v61 = vcombine.low %v158_v49, %v162_v50 }
  0x31   :  { %v2933_v53 = vcombine.high %v157_v47, %v161_v48  ;;  %v165_v55 = vld [vmem:[#allocation2 + $0x3c0] sm:$0xff]  ;;  %v170_v59 = vld [vmem:[#allocation2 + $0x3e8] sm:$0xff]  ;;  %v2932_v60 = vcombine.low %v157_v47, %v161_v48 }
  0x32   :  { %v169_v57 = vld [vmem:[#allocation2 + $0x3e0] sm:$0xff]  ;;  %v2943_v63 = vcombine.high %v166_v58, %v170_v59  ;;  %v174_v2 = vld [vmem:[#allocation2 + $0x408] sm:$0xff] }
  0x33   :  { %1658 = vmatpush1.bf16.msra.mxu0 %v2876_v3  ;;  %1744 = vmatpush1.bf16.msra.mxu1 %v2878_v4  ;;  %v2941_v62 = vcombine.high %v165_v55, %v169_v57  ;;  %v173_v0 = vld [vmem:[#allocation2 + $0x400] sm:$0xff]  ;;  %v178_v3 = vld [vmem:[#allocation2 + $0x428] sm:$0xff]  ;;  %v2940_v4 = vcombine.low %v165_v55, %v169_v57 }
  0x34   :  { %1659 = vmatprep.subr.bf16.mxu0 %v2885_v5  ;;  %1745 = vmatprep.subr.bf16.mxu1 %v2887_v6  ;;  %v177_v1 = vld [vmem:[#allocation2 + $0x420] sm:$0xff]  ;;  %v2942_v5 = vcombine.low %v166_v58, %v170_v59  ;;  %v2951_v7 = vcombine.high %v174_v2, %v178_v3 }
  0x35   :  { %v2949_v6 = vcombine.high %v173_v0, %v177_v1  ;;  %v181_v8 = vld [vmem:[#allocation2 + $0x440] sm:$0xff] }
  0x36   :  { %v185_v9 = vld [vmem:[#allocation2 + $0x460] sm:$0xff] }
  0x37   :  { %1660 = vmatpush1.bf16.msra.mxu0 %v2884_v11  ;;  %1746 = vmatpush1.bf16.msra.mxu1 %v2886_v12  ;;  %v3306_v10 = vld [vmem:[%s3755_s0] ss:$16 sps:$4 sm:$0xff]   ;;  %v182_v11 = vld [vmem:[#allocation2 + $0x448] sm:$0xff]  ;;  %v2957_v15 = vcombine.high %v181_v8, %v185_v9 }
  0x38   :  { %1661 = vmatprep.subr.bf16.mxu0 %v2893_v13  ;;  %1747 = vmatprep.subr.bf16.mxu1 %v2895_v14  ;;  %v186_v12 = vld [vmem:[#allocation2 + $0x468] sm:$0xff]  ;;  %v2948_v13 = vcombine.low %v173_v0, %v177_v1  ;;  %v2950_v14 = vcombine.low %v174_v2, %v178_v3  ;;  %v189_v17 = vld [vmem:[#allocation2 + $0x480] sm:$0xff] }
  0x39   :  { %v2959_v16 = vcombine.high %v182_v11, %v186_v12  ;;  %v193_v18 = vld [vmem:[#allocation2 + $0x4a0] sm:$0xff]  ;;  %v2958_v23 = vcombine.low %v182_v11, %v186_v12  ;;  %v246_v12 = vld [vmem:[#allocation2 + $0x648] sm:$0xff] }
  0x3a   :  { %v2965_v24 = vcombine.high %v189_v17, %v193_v18  ;;  %v197_v25 = vld [vmem:[#allocation2 + $0x4c0] sm:$0xff] }
  0x3b   :  { %1662 = vmatpush1.bf16.msra.mxu0 %v2892_v19  ;;  %1748 = vmatpush1.bf16.msra.mxu1 %v2894_v20  ;;  %v3307_v19 = vld [vmem:[%s3755_s0 + $0xc] ss:$16 sps:$4 sm:$0xff]   ;;  %v201_v26 = vld [vmem:[#allocation2 + $0x4e0] sm:$0xff] }
  0x3c   :  { %1663 = vmatprep.subr.bf16.mxu0 %v2901_v21  ;;  %1749 = vmatprep.subr.bf16.mxu1 %v2903_v22  ;;  %v190_v20 = vld [vmem:[#allocation2 + $0x488] sm:$0xff]  ;;  %v2956_v22 = vcombine.low %v181_v8, %v185_v9  ;;  %v2973_v32 = vcombine.high %v197_v25, %v201_v26  ;;  %v205_v33 = vld [vmem:[#allocation2 + $0x500] sm:$0xff] }
  0x3d   :  { %v194_v21 = vld [vmem:[#allocation2 + $0x4a8] sm:$0xff]  ;;  %v209_v34 = vld [vmem:[#allocation2 + $0x520] sm:$0xff] }
  0x3e   :  { %v2966_v31 = vcombine.low %v190_v20, %v194_v21  ;;  %v2981_v40 = vcombine.high %v205_v33, %v209_v34  ;;  %v213_v41 = vld [vmem:[#allocation2 + $0x540] sm:$0xff] }
  0x3f   :  { %1664 = vmatpush1.bf16.msra.mxu0 %v2900_v27  ;;  %1750 = vmatpush1.bf16.msra.mxu1 %v2902_v28  ;;  %v198_v27 = vld [vmem:[#allocation2 + $0x4c8] sm:$0xff]  ;;  %v2967_v28 = vcombine.high %v190_v20, %v194_v21  ;;  %v217_v42 = vld [vmem:[#allocation2 + $0x560] sm:$0xff] }
  0x40   :  { %1665 = vmatprep.subr.bf16.mxu0 %v2909_v29  ;;  %1751 = vmatprep.subr.bf16.mxu1 %v2911_v30  ;;  %v202_v29 = vld [vmem:[#allocation2 + $0x4e8] sm:$0xff]  ;;  %v2964_v30 = vcombine.low %v189_v17, %v193_v18  ;;  %v2989_v48 = vcombine.high %v213_v41, %v217_v42  ;;  %v221_v49 = vld [vmem:[#allocation2 + $0x580] sm:$0xff] }
  0x41   :  { %v2974_v39 = vcombine.low %v198_v27, %v202_v29  ;;  %v225_v50 = vld [vmem:[#allocation2 + $0x5a0] sm:$0xff]  ;;  %v254_v20 = vld [vmem:[#allocation2 + $0x688] sm:$0xff] }
  0x42   :  { %v2997_v57 = vcombine.high %v221_v49, %v225_v50  ;;  %v229_v58 = vld [vmem:[#allocation2 + $0x5c0] sm:$0xff] }
  0x43   :  { %1666 = vmatpush1.bf16.msra.mxu0 %v2908_v35  ;;  %1752 = vmatpush1.bf16.msra.mxu1 %v2910_v36  ;;  %v206_v35 = vld [vmem:[#allocation2 + $0x508] sm:$0xff]  ;;  %v2975_v36 = vcombine.high %v198_v27, %v202_v29  ;;  %v233_v59 = vld [vmem:[#allocation2 + $0x5e0] sm:$0xff] }
  0x44   :  { %1667 = vmatprep.subr.bf16.mxu0 %v2917_v37  ;;  %1753 = vmatprep.subr.bf16.mxu1 %v2919_v38  ;;  %v210_v37 = vld [vmem:[#allocation2 + $0x528] sm:$0xff]  ;;  %v2972_v38 = vcombine.low %v197_v25, %v201_v26  ;;  %v3005_v1 = vcombine.high %v229_v58, %v233_v59  ;;  %v237_v2 = vld [vmem:[#allocation2 + $0x600] sm:$0xff] }
  0x45   :  { %v2982_v47 = vcombine.low %v206_v35, %v210_v37  ;;  %v241_v3 = vld [vmem:[#allocation2 + $0x620] sm:$0xff] }
  0x46   :  { %v3013_v9 = vcombine.high %v237_v2, %v241_v3  ;;  %v249_v11 = vld [vmem:[#allocation2 + $0x660] sm:$0xff] }
  0x47   :  { %1668 = vmatpush1.bf16.msra.mxu0 %v2916_v43  ;;  %1754 = vmatpush1.bf16.msra.mxu1 %v2918_v44  ;;  %v214_v43 = vld [vmem:[#allocation2 + $0x548] sm:$0xff]  ;;  %v2983_v44 = vcombine.high %v206_v35, %v210_v37  ;;  %v253_v18 = vld [vmem:[#allocation2 + $0x680] sm:$0xff] }
  0x48   :  { %1669 = vmatprep.subr.bf16.mxu0 %v2925_v45  ;;  %1755 = vmatprep.subr.bf16.mxu1 %v2927_v46  ;;  %v218_v45 = vld [vmem:[#allocation2 + $0x568] sm:$0xff]  ;;  %v2980_v46 = vcombine.low %v205_v33, %v209_v34  ;;  %v261_v26 = vld [vmem:[#allocation2 + $0x6c0] sm:$0xff] }
  0x49   :  { %v2990_v55 = vcombine.low %v214_v43, %v218_v45  ;;  %v265_v27 = vld [vmem:[#allocation2 + $0x6e0] sm:$0xff] }
  0x4a   :  { %v3037_v33 = vcombine.high %v261_v26, %v265_v27  ;;  %v269_v34 = vld [vmem:[#allocation2 + $0x700] sm:$0xff] }
  0x4b   :  { %1670 = vmatpush1.bf16.msra.mxu0 %v2924_v51  ;;  %1756 = vmatpush1.bf16.msra.mxu1 %v2926_v52  ;;  %v222_v51 = vld [vmem:[#allocation2 + $0x588] sm:$0xff]  ;;  %v2991_v52 = vcombine.high %v214_v43, %v218_v45  ;;  %v273_v35 = vld [vmem:[#allocation2 + $0x720] sm:$0xff] }
  0x4c   :  { %1671 = vmatprep.subr.bf16.mxu0 %v2933_v53  ;;  %1757 = vmatprep.subr.bf16.mxu1 %v2935_v54  ;;  %v226_v53 = vld [vmem:[#allocation2 + $0x5a8] sm:$0xff]  ;;  %v2988_v54 = vcombine.low %v213_v41, %v217_v42  ;;  %v3045_v41 = vcombine.high %v269_v34, %v273_v35  ;;  %v277_v42 = vld [vmem:[#allocation2 + $0x740] sm:$0xff] }
  0x4d   :  { %v2998_v0 = vcombine.low %v222_v51, %v226_v53  ;;  %v281_v43 = vld [vmem:[#allocation2 + $0x760] sm:$0xff] }
  0x4f   :  { %1672 = vmatpush1.bf16.msra.mxu0 %v2932_v60  ;;  %1758 = vmatpush1.bf16.msra.mxu1 %v2934_v61  ;;  %v230_v60 = vld [vmem:[#allocation2 + $0x5c8] sm:$0xff]  ;;  %v2999_v61 = vcombine.high %v222_v51, %v226_v53  ;;  %v289_v51 = vld [vmem:[#allocation2 + $0x7a0] sm:$0xff] }
  0x50   :  { %1673 = vmatprep.subr.bf16.mxu0 %v2941_v62  ;;  %1759 = vmatprep.subr.bf16.mxu1 %v2943_v63  ;;  %v234_v62 = vld [vmem:[#allocation2 + $0x5e8] sm:$0xff]  ;;  %v2996_v63 = vcombine.low %v221_v49, %v225_v50  ;;  %v3053_v49 = vcombine.high %v277_v42, %v281_v43  ;;  %v285_v50 = vld [vmem:[#allocation2 + $0x780] sm:$0xff] }
  0x51   :  { %v3006_v8 = vcombine.low %v230_v60, %v234_v62 }
  0x53   :  { %1674 = vmatpush1.bf16.msra.mxu0 %v2940_v4  ;;  %1760 = vmatpush1.bf16.msra.mxu1 %v2942_v5  ;;  %v238_v4 = vld [vmem:[#allocation2 + $0x608] sm:$0xff]  ;;  %v3007_v5 = vcombine.high %v230_v60, %v234_v62  ;;  %v297_v60 = vld [vmem:[#allocation2 + $0x7e0] sm:$0xff] }
  0x54   :  { %1686 = vmatprep.subr.bf16.mxu0 %v2949_v6  ;;  %1772 = vmatprep.subr.bf16.mxu1 %v2951_v7  ;;  %v242_v6 = vld [vmem:[#allocation2 + $0x628] sm:$0xff]  ;;  %v3004_v7 = vcombine.low %v229_v58, %v233_v59  ;;  %v3061_v58 = vcombine.high %v285_v50, %v289_v51  ;;  %v293_v59 = vld [vmem:[#allocation2 + $0x7c0] sm:$0xff] }
  0x56   :  { %1676 = vmatmul.mubr.bf16.vlgmr.msra.gmra.mrb[0].mxu0 %v3306_v10  ;;  %1762 = vmatmul.mubr.bf16.vlgmr.msra.gmra.mrb[0].mxu1 %v3306_v10  ;;  %v245_v10 = vld [vmem:[#allocation2 + $0x640] sm:$0xff] }
  0x57   :  { %1687 = vmatpush1.bf16.msra.mxu0 %v2948_v13  ;;  %1773 = vmatpush1.bf16.msra.mxu1 %v2950_v14  ;;  %v3015_v13 = vcombine.high %v238_v4, %v242_v6  ;;  %v250_v14 = vld [vmem:[#allocation2 + $0x668] sm:$0xff]  ;;  %v3021_v17 = vcombine.high %v245_v10, %v249_v11 }
  0x58   :  { %1688 = vmatprep.subr.bf16.mxu0 %v2957_v15  ;;  %1774 = vmatprep.subr.bf16.mxu1 %v2959_v16  ;;  %v3012_v15 = vcombine.low %v237_v2, %v241_v3  ;;  %v3014_v16 = vcombine.low %v238_v4, %v242_v6  ;;  %v3023_v21 = vcombine.high %v246_v12, %v250_v14  ;;  %v47_v3 = vld [vmem:[#allocation2 + $0x10] sm:$0xff] }
  0x59   :  { %1718 = vmatprep.mubr.bf16.mxu0 %v3307_v19  ;;  %1804 = vmatprep.mubr.bf16.mxu1 %v3307_v19  ;;  %v257_v19 = vld [vmem:[#allocation2 + $0x6a0] sm:$0xff]  ;;  %v3069_v2 = vcombine.high %v293_v59, %v297_v60  ;;  %v51_v4 = vld [vmem:[#allocation2 + $0x30] sm:$0xff] }
  0x5a   :  { %v3029_v25 = vcombine.high %v253_v18, %v257_v19 }
  0x5b   :  { %1689 = vmatpush1.bf16.msra.mxu0 %v2956_v22  ;;  %1775 = vmatpush1.bf16.msra.mxu1 %v2958_v23  ;;  %v258_v22 = vld [vmem:[#allocation2 + $0x6a8] sm:$0xff]  ;;  %v3020_v23 = vcombine.low %v245_v10, %v249_v11  ;;  %v2825_v11 = vcombine.high %v47_v3, %v51_v4 }
  0x5c   :  { %1690 = vmatprep.subr.bf16.mxu0 %v2965_v24  ;;  %1776 = vmatprep.subr.bf16.mxu1 %v2967_v28  ;;  %v3022_v24 = vcombine.low %v246_v12, %v250_v14  ;;  %v262_v28 = vld [vmem:[#allocation2 + $0x6c8] sm:$0xff]  ;;  %v3031_v29 = vcombine.high %v254_v20, %v258_v22  ;;  %v55_v12 = vld [vmem:[#allocation2 + $0x50] sm:$0xff]  ;;  %v56_v14 = vld [vmem:[#allocation2 + $0x58] sm:$0xff] }
  0x5d   :  { %v3481_v10 = vld [vmem:[%s3755_s0 + $0x8] ss:$16 sps:$4 sm:$0xff]  }
  0x5f   :  { %1691 = vmatpush1.bf16.msra.mxu0 %v2964_v30  ;;  %1777 = vmatpush1.bf16.msra.mxu1 %v2966_v31  ;;  %v266_v30 = vld [vmem:[#allocation2 + $0x6e8] sm:$0xff]  ;;  %v3028_v31 = vcombine.low %v253_v18, %v257_v19  ;;  %v63_v18 = vld [vmem:[#allocation2 + $0x90] sm:$0xff] }
  0x60   :  { %1692 = vmatprep.subr.bf16.mxu0 %v2973_v32  ;;  %1778 = vmatprep.subr.bf16.mxu1 %v2975_v36  ;;  %v3030_v32 = vcombine.low %v254_v20, %v258_v22  ;;  %v270_v36 = vld [vmem:[#allocation2 + $0x708] sm:$0xff]  ;;  %v3039_v37 = vcombine.high %v262_v28, %v266_v30  ;;  %v67_v19 = vld [vmem:[#allocation2 + $0xb0] sm:$0xff]  ;;  %v64_v22 = vld [vmem:[#allocation2 + $0x98] sm:$0xff] }
  0x63   :  { %1693 = vmatpush1.bf16.msra.mxu0 %v2972_v38  ;;  %1779 = vmatpush1.bf16.msra.mxu1 %v2974_v39  ;;  %v274_v38 = vld [vmem:[#allocation2 + $0x728] sm:$0xff]  ;;  %v3036_v39 = vcombine.low %v261_v26, %v265_v27  ;;  %v2841_v27 = vcombine.high %v63_v18, %v67_v19 }
  0x64   :  { %1694 = vmatprep.subr.bf16.mxu0 %v2981_v40  ;;  %1780 = vmatprep.subr.bf16.mxu1 %v2983_v44  ;;  %v3038_v40 = vcombine.low %v262_v28, %v266_v30  ;;  %v278_v44 = vld [vmem:[#allocation2 + $0x748] sm:$0xff]  ;;  %v3047_v45 = vcombine.high %v270_v36, %v274_v38  ;;  %v71_v28 = vld [vmem:[#allocation2 + $0xd0] sm:$0xff]  ;;  %v72_v30 = vld [vmem:[#allocation2 + $0xd8] sm:$0xff] }
  0x67   :  { %1695 = vmatpush1.bf16.msra.mxu0 %v2980_v46  ;;  %1781 = vmatpush1.bf16.msra.mxu1 %v2982_v47  ;;  %v282_v46 = vld [vmem:[#allocation2 + $0x768] sm:$0xff]  ;;  %v3044_v47 = vcombine.low %v269_v34, %v273_v35 }
  0x68   :  { %1696 = vmatprep.subr.bf16.mxu0 %v2989_v48  ;;  %1782 = vmatprep.subr.bf16.mxu1 %v2991_v52  ;;  %v3046_v48 = vcombine.low %v270_v36, %v274_v38  ;;  %v286_v52 = vld [vmem:[#allocation2 + $0x788] sm:$0xff]  ;;  %v3055_v53 = vcombine.high %v278_v44, %v282_v46  ;;  %v79_v36 = vld [vmem:[#allocation2 + $0x110] sm:$0xff] }
  0x6b   :  { %1697 = vmatpush1.bf16.msra.mxu0 %v2988_v54  ;;  %1783 = vmatpush1.bf16.msra.mxu1 %v2990_v55  ;;  %v290_v54 = vld [vmem:[#allocation2 + $0x7a8] sm:$0xff]  ;;  %v3052_v55 = vcombine.low %v277_v42, %v281_v43 }
  0x6c   :  { %1698 = vmatprep.subr.bf16.mxu0 %v2997_v57  ;;  %1784 = vmatprep.subr.bf16.mxu1 %v2999_v61  ;;  %v3054_v57 = vcombine.low %v278_v44, %v282_v46  ;;  %v294_v61 = vld [vmem:[#allocation2 + $0x7c8] sm:$0xff]  ;;  %v3063_v62 = vcombine.high %v286_v52, %v290_v54  ;;  %v87_v44 = vld [vmem:[#allocation2 + $0x150] sm:$0xff]  ;;  %v88_v46 = vld [vmem:[#allocation2 + $0x158] sm:$0xff] }
  0x6f   :  { %1699 = vmatpush1.bf16.msra.mxu0 %v2996_v63  ;;  %1785 = vmatpush1.bf16.msra.mxu1 %v2998_v0  ;;  %v298_v63 = vld [vmem:[#allocation2 + $0x7e8] sm:$0xff]  ;;  %v3060_v0 = vcombine.low %v285_v50, %v289_v51 }
  0x70   :  { %1700 = vmatprep.subr.bf16.mxu0 %v3005_v1  ;;  %1786 = vmatprep.subr.bf16.mxu1 %v3007_v5  ;;  %v3062_v1 = vcombine.low %v286_v52, %v290_v54  ;;  %v48_v5 = vld [vmem:[#allocation2 + $0x18] sm:$0xff]  ;;  %v3071_v6 = vcombine.high %v294_v61, %v298_v63  ;;  %v95_v52 = vld [vmem:[#allocation2 + $0x190] sm:$0xff] }
  0x71   :  { %v96_v54 = vld [vmem:[#allocation2 + $0x198] sm:$0xff] }
  0x73   :  { %1701 = vmatpush1.bf16.msra.mxu0 %v3004_v7  ;;  %1787 = vmatpush1.bf16.msra.mxu1 %v3006_v8  ;;  %v52_v7 = vld [vmem:[#allocation2 + $0x38] sm:$0xff]  ;;  %v3068_v8 = vcombine.low %v293_v59, %v297_v60 }
  0x74   :  { %1702 = vmatprep.subr.bf16.mxu0 %v3013_v9  ;;  %1788 = vmatprep.subr.bf16.mxu1 %v3015_v13  ;;  %v3070_v9 = vcombine.low %v294_v61, %v298_v63  ;;  %v59_v13 = vld [vmem:[#allocation2 + $0x70] sm:$0xff]  ;;  %v2826_v20 = vcombine.low %v48_v5, %v52_v7  ;;  %v104_v63 = vld [vmem:[#allocation2 + $0x1d8] sm:$0xff] }
  0x75   :  { %v103_v61 = vld [vmem:[#allocation2 + $0x1d0] sm:$0xff] }
  0x77   :  { %1703 = vmatpush1.bf16.msra.mxu0 %v3012_v15  ;;  %1789 = vmatpush1.bf16.msra.mxu1 %v3014_v16  ;;  %v2827_v15 = vcombine.high %v48_v5, %v52_v7  ;;  %v60_v16 = vld [vmem:[#allocation2 + $0x78] sm:$0xff]  ;;  %v111_v5 = vld [vmem:[#allocation2 + $0x210] sm:$0xff] }
  0x78   :  { %1704 = vmatprep.subr.bf16.mxu0 %v3021_v17  ;;  %1790 = vmatprep.subr.bf16.mxu1 %v3023_v21  ;;  %v2824_v17 = vcombine.low %v47_v3, %v51_v4  ;;  %v2833_v21 = vcombine.high %v55_v12, %v59_v13  ;;  %v2834_v26 = vcombine.low %v56_v14, %v60_v16  ;;  %v112_v7 = vld [vmem:[#allocation2 + $0x218] sm:$0xff] }
  0x7b   :  { %1705 = vmatpush1.bf16.msra.mxu0 %v3020_v23  ;;  %1791 = vmatpush1.bf16.msra.mxu1 %v3022_v24  ;;  %v68_v23 = vld [vmem:[#allocation2 + $0xb8] sm:$0xff]  ;;  %v2835_v24 = vcombine.high %v56_v14, %v60_v16  ;;  %v119_v14 = vld [vmem:[#allocation2 + $0x250] sm:$0xff] }
  0x7c   :  { %1706 = vmatprep.subr.bf16.mxu0 %v3029_v25  ;;  %1792 = vmatprep.subr.bf16.mxu1 %v3031_v29  ;;  %v2832_v25 = vcombine.low %v55_v12, %v59_v13  ;;  %v75_v29 = vld [vmem:[#allocation2 + $0xf0] sm:$0xff]  ;;  %v2842_v34 = vcombine.low %v64_v22, %v68_v23  ;;  %v120_v16 = vld [vmem:[#allocation2 + $0x258] sm:$0xff] }
  0x7d   :  { %v2849_v35 = vcombine.high %v71_v28, %v75_v29 }
  0x7f   :  { %1707 = vmatpush1.bf16.msra.mxu0 %v3028_v31  ;;  %1793 = vmatpush1.bf16.msra.mxu1 %v3030_v32  ;;  %v2843_v31 = vcombine.high %v64_v22, %v68_v23  ;;  %v76_v32 = vld [vmem:[#allocation2 + $0xf8] sm:$0xff]  ;;  %v127_v22 = vld [vmem:[#allocation2 + $0x290] sm:$0xff] }
  0x80   :  { %1708 = vmatprep.subr.bf16.mxu0 %v3037_v33  ;;  %1794 = vmatprep.subr.bf16.mxu1 %v3039_v37  ;;  %v2840_v33 = vcombine.low %v63_v18, %v67_v19  ;;  %v83_v37 = vld [vmem:[#allocation2 + $0x130] sm:$0xff]  ;;  %v2851_v38 = vcombine.high %v72_v30, %v76_v32  ;;  %v2850_v42 = vcombine.low %v72_v30, %v76_v32  ;;  %v136_v32 = vld [vmem:[#allocation2 + $0x2d8] sm:$0xff] }
  0x81   :  { %v2857_v43 = vcombine.high %v79_v36, %v83_v37  ;;  %v131_v23 = vld [vmem:[#allocation2 + $0x2b0] sm:$0xff] }
  0x82   :  { %v135_v30 = vld [vmem:[#allocation2 + $0x2d0] sm:$0xff] }
  0x83   :  { %1709 = vmatpush1.bf16.msra.mxu0 %v3036_v39  ;;  %1795 = vmatpush1.bf16.msra.mxu1 %v3038_v40  ;;  %v80_v39 = vld [vmem:[#allocation2 + $0x118] sm:$0xff] }
  0x84   :  { %1710 = vmatprep.subr.bf16.mxu0 %v3045_v41  ;;  %1796 = vmatprep.subr.bf16.mxu1 %v3047_v45  ;;  %v84_v40 = vld [vmem:[#allocation2 + $0x138] sm:$0xff]  ;;  %v2848_v41 = vcombine.low %v71_v28, %v75_v29  ;;  %v91_v45 = vld [vmem:[#allocation2 + $0x170] sm:$0xff]  ;;  %v2905_v28 = vcombine.high %v127_v22, %v131_v23 }
  0x85   :  { %v2865_v50 = vcombine.high %v87_v44, %v91_v45 }
  0x87   :  { %1711 = vmatpush1.bf16.msra.mxu0 %v3044_v47  ;;  %1797 = vmatpush1.bf16.msra.mxu1 %v3046_v48  ;;  %v92_v47 = vld [vmem:[#allocation2 + $0x178] sm:$0xff]  ;;  %v2856_v48 = vcombine.low %v79_v36, %v83_v37 }
  0x88   :  { %1712 = vmatprep.subr.bf16.mxu0 %v3053_v49  ;;  %1798 = vmatprep.subr.bf16.mxu1 %v3055_v53  ;;  %v2858_v49 = vcombine.low %v80_v39, %v84_v40  ;;  %v2867_v51 = vcombine.high %v88_v46, %v92_v47  ;;  %v99_v53 = vld [vmem:[#allocation2 + $0x1b0] sm:$0xff] }
  0x89   :  { %v2873_v59 = vcombine.high %v95_v52, %v99_v53 }
  0x8b   :  { %1713 = vmatpush1.bf16.msra.mxu0 %v3052_v55  ;;  %1799 = vmatpush1.bf16.msra.mxu1 %v3054_v57  ;;  %v100_v55 = vld [vmem:[#allocation2 + $0x1b8] sm:$0xff]  ;;  %v2864_v57 = vcombine.low %v87_v44, %v91_v45  ;;  %v151_v45 = vld [vmem:[#allocation2 + $0x350] sm:$0xff] }
  0x8c   :  { %1714 = vmatprep.subr.bf16.mxu0 %v3061_v58  ;;  %1800 = vmatprep.subr.bf16.mxu1 %v3063_v62  ;;  %v2866_v58 = vcombine.low %v88_v46, %v92_v47  ;;  %v2875_v60 = vcombine.high %v96_v54, %v100_v55  ;;  %v107_v62 = vld [vmem:[#allocation2 + $0x1f0] sm:$0xff]  ;;  %v152_v47 = vld [vmem:[#allocation2 + $0x358] sm:$0xff] }
  0x8d   :  { %v2881_v3 = vcombine.high %v103_v61, %v107_v62  ;;  %v155_v46 = vld [vmem:[#allocation2 + $0x370] sm:$0xff] }
  0x8f   :  { %1715 = vmatpush1.bf16.msra.mxu0 %v3060_v0  ;;  %1801 = vmatpush1.bf16.msra.mxu1 %v3062_v1  ;;  %v108_v0 = vld [vmem:[#allocation2 + $0x1f8] sm:$0xff]  ;;  %v2872_v1 = vcombine.low %v95_v52, %v99_v53  ;;  %v159_v53 = vld [vmem:[#allocation2 + $0x390] sm:$0xff] }
  0x90   :  { %1716 = vmatprep.subr.bf16.mxu0 %v3069_v2  ;;  %1802 = vmatprep.subr.bf16.mxu1 %v3071_v6  ;;  %v2874_v2 = vcombine.low %v96_v54, %v100_v55  ;;  %v2883_v4 = vcombine.high %v104_v63, %v108_v0  ;;  %v115_v6 = vld [vmem:[#allocation2 + $0x230] sm:$0xff]  ;;  %v160_v55 = vld [vmem:[#allocation2 + $0x398] sm:$0xff] }
  0x91   :  { %v2889_v12 = vcombine.high %v111_v5, %v115_v6  ;;  %v2888_v18 = vcombine.low %v111_v5, %v115_v6  ;;  %v163_v54 = vld [vmem:[#allocation2 + $0x3b0] sm:$0xff] }
  0x92   :  { %v175_v6 = vld [vmem:[#allocation2 + $0x410] sm:$0xff] }
  0x93   :  { %1717 = vmatpush1.bf16.msra.mxu0 %v3068_v8  ;;  %1803 = vmatpush1.bf16.msra.mxu1 %v3070_v9  ;;  %v116_v8 = vld [vmem:[#allocation2 + $0x238] sm:$0xff]  ;;  %v2880_v9 = vcombine.low %v103_v61, %v107_v62  ;;  %v167_v62 = vld [vmem:[#allocation2 + $0x3d0] sm:$0xff] }
  0x94   :  { %1815 = vmatprep.subr.bf16.mxu0 %v2825_v11  ;;  %1901 = vmatprep.subr.bf16.mxu1 %v2827_v15  ;;  %v2882_v11 = vcombine.low %v104_v63, %v108_v0  ;;  %v2891_v13 = vcombine.high %v112_v7, %v116_v8  ;;  %v123_v15 = vld [vmem:[#allocation2 + $0x270] sm:$0xff]  ;;  %v2890_v19 = vcombine.low %v112_v7, %v116_v8  ;;  %v168_v0 = vld [vmem:[#allocation2 + $0x3d8] sm:$0xff] }
  0x95   :  { %v171_v63 = vld [vmem:[#allocation2 + $0x3f0] sm:$0xff]  ;;  %v176_v8 = vld [vmem:[#allocation2 + $0x418] sm:$0xff] }
  0x96   :  { %1719 = vmatmul.mubr.bf16.vlgmr.msra.gmra.mrb[0].mxu0 %v3481_v10  ;;  %1805 = vmatmul.mubr.bf16.vlgmr.msra.gmra.mrb[0].mxu1 %v3481_v10  ;;  %v179_v7 = vld [vmem:[#allocation2 + $0x430] sm:$0xff] }
  0x97   :  { %1816 = vmatpush1.bf16.msra.mxu0 %v2824_v17  ;;  %1902 = vmatpush1.bf16.msra.mxu1 %v2826_v20  ;;  %v124_v17 = vld [vmem:[#allocation2 + $0x278] sm:$0xff]  ;;  %v2897_v20 = vcombine.high %v119_v14, %v123_v15 }
  0x98   :  { %1817 = vmatprep.subr.bf16.mxu0 %v2833_v21  ;;  %1903 = vmatprep.subr.bf16.mxu1 %v2835_v24  ;;  %v2899_v21 = vcombine.high %v120_v16, %v124_v17  ;;  %v128_v24 = vld [vmem:[#allocation2 + $0x298] sm:$0xff] }
  0x99   :  { %1847 = vmatprep.mubr.bf16.mxu0 %v3468_v56  ;;  %1933 = vmatprep.mubr.bf16.mxu1 %v3468_v56  ;;  %v2859_v56 = vcombine.high %v80_v39, %v84_v40  ;;  %v147_v39 = vld [vmem:[#allocation2 + $0x330] sm:$0xff]  ;;  %v144_v40 = vld [vmem:[#allocation2 + $0x318] sm:$0xff] }
  0x9b   :  { %1818 = vmatpush1.bf16.msra.mxu0 %v2832_v25  ;;  %1904 = vmatpush1.bf16.msra.mxu1 %v2834_v26  ;;  %v132_v25 = vld [vmem:[#allocation2 + $0x2b8] sm:$0xff]  ;;  %v2896_v26 = vcombine.low %v119_v14, %v123_v15  ;;  %v183_v15 = vld [vmem:[#allocation2 + $0x450] sm:$0xff] }
  0x9c   :  { %1819 = vmatprep.subr.bf16.mxu0 %v2841_v27  ;;  %1905 = vmatprep.subr.bf16.mxu1 %v2843_v31  ;;  %v2898_v27 = vcombine.low %v120_v16, %v124_v17  ;;  %v2907_v29 = vcombine.high %v128_v24, %v132_v25  ;;  %v139_v31 = vld [vmem:[#allocation2 + $0x2f0] sm:$0xff]  ;;  %v184_v17 = vld [vmem:[#allocation2 + $0x458] sm:$0xff] }
  0x9d   :  { %v2913_v36 = vcombine.high %v135_v30, %v139_v31  ;;  %v187_v16 = vld [vmem:[#allocation2 + $0x470] sm:$0xff] }
  0x9f   :  { %1820 = vmatpush1.bf16.msra.mxu0 %v2840_v33  ;;  %1906 = vmatpush1.bf16.msra.mxu1 %v2842_v34  ;;  %v140_v33 = vld [vmem:[#allocation2 + $0x2f8] sm:$0xff]  ;;  %v2904_v34 = vcombine.low %v127_v22, %v131_v23  ;;  %v191_v23 = vld [vmem:[#allocation2 + $0x490] sm:$0xff] }
  0xa0   :  { %1821 = vmatprep.subr.bf16.mxu0 %v2849_v35  ;;  %1907 = vmatprep.subr.bf16.mxu1 %v2851_v38  ;;  %v2906_v35 = vcombine.low %v128_v24, %v132_v25  ;;  %v2915_v37 = vcombine.high %v136_v32, %v140_v33  ;;  %v143_v38 = vld [vmem:[#allocation2 + $0x310] sm:$0xff] }
  0xa1   :  { %v195_v24 = vld [vmem:[#allocation2 + $0x4b0] sm:$0xff] }
  0xa2   :  { %v3382_v25 = vld [vmem:[%s3755_s0] ss:$16 sps:$4 sm:$0xff]  }
  0xa3   :  { %1822 = vmatpush1.bf16.msra.mxu0 %v2848_v41  ;;  %1908 = vmatpush1.bf16.msra.mxu1 %v2850_v42  ;;  %v148_v41 = vld [vmem:[#allocation2 + $0x338] sm:$0xff]  ;;  %v2912_v42 = vcombine.low %v135_v30, %v139_v31  ;;  %v2969_v30 = vcombine.high %v191_v23, %v195_v24 }
  0xa4   :  { %1823 = vmatprep.subr.bf16.mxu0 %v2857_v43  ;;  %1909 = vmatprep.subr.bf16.mxu1 %v2859_v56  ;;  %v2914_v43 = vcombine.low %v136_v32, %v140_v33  ;;  %v2921_v56 = vcombine.high %v143_v38, %v147_v39  ;;  %v2923_v44 = vcombine.high %v144_v40, %v148_v41  ;;  %v199_v32 = vld [vmem:[#allocation2 + $0x4d0] sm:$0xff] }
  0xa5   :  { %v203_v33 = vld [vmem:[#allocation2 + $0x4f0] sm:$0xff] }
  0xa7   :  { %1824 = vmatpush1.bf16.msra.mxu0 %v2856_v48  ;;  %1910 = vmatpush1.bf16.msra.mxu1 %v2858_v49  ;;  %v156_v48 = vld [vmem:[#allocation2 + $0x378] sm:$0xff]  ;;  %v2920_v49 = vcombine.low %v143_v38, %v147_v39  ;;  %v2977_v39 = vcombine.high %v199_v32, %v203_v33 }
  0xa8   :  { %1825 = vmatprep.subr.bf16.mxu0 %v2865_v50  ;;  %1911 = vmatprep.subr.bf16.mxu1 %v2867_v51  ;;  %v2922_v50 = vcombine.low %v144_v40, %v148_v41  ;;  %v2929_v51 = vcombine.high %v151_v45, %v155_v46  ;;  %v2931_v52 = vcombine.high %v152_v47, %v156_v48  ;;  %v207_v41 = vld [vmem:[#allocation2 + $0x510] sm:$0xff] }
  0xab   :  { %1826 = vmatpush1.bf16.msra.mxu0 %v2864_v57  ;;  %1912 = vmatpush1.bf16.msra.mxu1 %v2866_v58  ;;  %v164_v57 = vld [vmem:[#allocation2 + $0x3b8] sm:$0xff]  ;;  %v2928_v58 = vcombine.low %v151_v45, %v155_v46 }
  0xac   :  { %1827 = vmatprep.subr.bf16.mxu0 %v2873_v59  ;;  %1913 = vmatprep.subr.bf16.mxu1 %v2875_v60  ;;  %v2930_v59 = vcombine.low %v152_v47, %v156_v48  ;;  %v2937_v60 = vcombine.high %v159_v53, %v163_v54  ;;  %v2939_v61 = vcombine.high %v160_v55, %v164_v57  ;;  %v215_v48 = vld [vmem:[#allocation2 + $0x550] sm:$0xff] }
  0xaf   :  { %1828 = vmatpush1.bf16.msra.mxu0 %v2872_v1  ;;  %1914 = vmatpush1.bf16.msra.mxu1 %v2874_v2  ;;  %v172_v1 = vld [vmem:[#allocation2 + $0x3f8] sm:$0xff]  ;;  %v2936_v2 = vcombine.low %v159_v53, %v163_v54 }
  0xb0   :  { %1829 = vmatprep.subr.bf16.mxu0 %v2881_v3  ;;  %1915 = vmatprep.subr.bf16.mxu1 %v2883_v4  ;;  %v2938_v3 = vcombine.low %v160_v55, %v164_v57  ;;  %v2945_v4 = vcombine.high %v167_v62, %v171_v63  ;;  %v2947_v5 = vcombine.high %v168_v0, %v172_v1  ;;  %v223_v57 = vld [vmem:[#allocation2 + $0x590] sm:$0xff] }
  0xb3   :  { %1830 = vmatpush1.bf16.msra.mxu0 %v2880_v9  ;;  %1916 = vmatpush1.bf16.msra.mxu1 %v2882_v11  ;;  %v180_v9 = vld [vmem:[#allocation2 + $0x438] sm:$0xff]  ;;  %v2944_v11 = vcombine.low %v167_v62, %v171_v63 }
  0xb4   :  { %1831 = vmatprep.subr.bf16.mxu0 %v2889_v12  ;;  %1917 = vmatprep.subr.bf16.mxu1 %v2891_v13  ;;  %v2946_v12 = vcombine.low %v168_v0, %v172_v1  ;;  %v2953_v13 = vcombine.high %v175_v6, %v179_v7  ;;  %v2955_v14 = vcombine.high %v176_v8, %v180_v9  ;;  %v231_v1 = vld [vmem:[#allocation2 + $0x5d0] sm:$0xff] }
  0xb7   :  { %1832 = vmatpush1.bf16.msra.mxu0 %v2888_v18  ;;  %1918 = vmatpush1.bf16.msra.mxu1 %v2890_v19  ;;  %v188_v18 = vld [vmem:[#allocation2 + $0x478] sm:$0xff]  ;;  %v2952_v19 = vcombine.low %v175_v6, %v179_v7 }
  0xb8   :  { %1833 = vmatprep.subr.bf16.mxu0 %v2897_v20  ;;  %1919 = vmatprep.subr.bf16.mxu1 %v2899_v21  ;;  %v2954_v20 = vcombine.low %v176_v8, %v180_v9  ;;  %v2961_v21 = vcombine.high %v183_v15, %v187_v16  ;;  %v2963_v22 = vcombine.high %v184_v17, %v188_v18  ;;  %v239_v9 = vld [vmem:[#allocation2 + $0x610] sm:$0xff] }
  0xbb   :  { %1834 = vmatpush1.bf16.msra.mxu0 %v2896_v26  ;;  %1920 = vmatpush1.bf16.msra.mxu1 %v2898_v27  ;;  %v192_v26 = vld [vmem:[#allocation2 + $0x498] sm:$0xff] }
  0xbc   :  { %1835 = vmatprep.subr.bf16.mxu0 %v2905_v28  ;;  %1921 = vmatprep.subr.bf16.mxu1 %v2907_v29  ;;  %v196_v27 = vld [vmem:[#allocation2 + $0x4b8] sm:$0xff]  ;;  %v2960_v28 = vcombine.low %v183_v15, %v187_v16  ;;  %v2962_v29 = vcombine.low %v184_v17, %v188_v18  ;;  %v247_v18 = vld [vmem:[#allocation2 + $0x650] sm:$0xff] }
  0xbd   :  { %v2971_v31 = vcombine.high %v192_v26, %v196_v27  ;;  %v2970_v38 = vcombine.low %v192_v26, %v196_v27  ;;  %v255_v26 = vld [vmem:[#allocation2 + $0x690] sm:$0xff] }
  0xbe   :  { %v259_v27 = vld [vmem:[#allocation2 + $0x6b0] sm:$0xff] }
  0xbf   :  { %1836 = vmatpush1.bf16.msra.mxu0 %v2904_v34  ;;  %1922 = vmatpush1.bf16.msra.mxu1 %v2906_v35  ;;  %v3383_v34 = vld [vmem:[%s3755_s0 + $0xc] ss:$16 sps:$4 sm:$0xff]  }
  0xc0   :  { %1837 = vmatprep.subr.bf16.mxu0 %v2913_v36  ;;  %1923 = vmatprep.subr.bf16.mxu1 %v2915_v37  ;;  %v200_v35 = vld [vmem:[#allocation2 + $0x4d8] sm:$0xff]  ;;  %v2968_v37 = vcombine.low %v191_v23, %v195_v24 }
  0xc1   :  { %v204_v36 = vld [vmem:[#allocation2 + $0x4f8] sm:$0xff] }
  0xc2   :  { %v2979_v40 = vcombine.high %v200_v35, %v204_v36  ;;  %v2978_v45 = vcombine.low %v200_v35, %v204_v36  ;;  %v267_v35 = vld [vmem:[#allocation2 + $0x6f0] sm:$0xff]  ;;  %v264_v36 = vld [vmem:[#allocation2 + $0x6d8] sm:$0xff] }
  0xc3   :  { %1838 = vmatpush1.bf16.msra.mxu0 %v2912_v42  ;;  %1924 = vmatpush1.bf16.msra.mxu1 %v2914_v43  ;;  %v211_v42 = vld [vmem:[#allocation2 + $0x530] sm:$0xff]  ;;  %v208_v43 = vld [vmem:[#allocation2 + $0x518] sm:$0xff] }
  0xc4   :  { %1839 = vmatprep.subr.bf16.mxu0 %v2921_v56  ;;  %1925 = vmatprep.subr.bf16.mxu1 %v2923_v44  ;;  %v212_v56 = vld [vmem:[#allocation2 + $0x538] sm:$0xff]  ;;  %v2976_v44 = vcombine.low %v199_v32, %v203_v33  ;;  %v2985_v46 = vcombine.high %v207_v41, %v211_v42  ;;  %v3033_v32 = vcombine.high %v255_v26, %v259_v27 }
  0xc5   :  { %v2987_v47 = vcombine.high %v208_v43, %v212_v56  ;;  %v2986_v53 = vcombine.low %v208_v43, %v212_v56  ;;  %v275_v43 = vld [vmem:[#allocation2 + $0x730] sm:$0xff]  ;;  %v272_v56 = vld [vmem:[#allocation2 + $0x718] sm:$0xff] }
  0xc7   :  { %1840 = vmatpush1.bf16.msra.mxu0 %v2920_v49  ;;  %1926 = vmatpush1.bf16.msra.mxu1 %v2922_v50  ;;  %v219_v49 = vld [vmem:[#allocation2 + $0x570] sm:$0xff]  ;;  %v216_v50 = vld [vmem:[#allocation2 + $0x558] sm:$0xff] }
  0xc8   :  { %1841 = vmatprep.subr.bf16.mxu0 %v2929_v51  ;;  %1927 = vmatprep.subr.bf16.mxu1 %v2931_v52  ;;  %v220_v51 = vld [vmem:[#allocation2 + $0x578] sm:$0xff]  ;;  %v2984_v52 = vcombine.low %v207_v41, %v211_v42  ;;  %v2993_v54 = vcombine.high %v215_v48, %v219_v49  ;;  %v271_v42 = vld [vmem:[#allocation2 + $0x710] sm:$0xff] }
  0xc9   :  { %v2995_v55 = vcombine.high %v216_v50, %v220_v51  ;;  %v2994_v62 = vcombine.low %v216_v50, %v220_v51  ;;  %v283_v50 = vld [vmem:[#allocation2 + $0x770] sm:$0xff]  ;;  %v280_v51 = vld [vmem:[#allocation2 + $0x758] sm:$0xff] }
  0xcb   :  { %1842 = vmatpush1.bf16.msra.mxu0 %v2928_v58  ;;  %1928 = vmatpush1.bf16.msra.mxu1 %v2930_v59  ;;  %v227_v58 = vld [vmem:[#allocation2 + $0x5b0] sm:$0xff]  ;;  %v224_v59 = vld [vmem:[#allocation2 + $0x598] sm:$0xff] }
  0xcc   :  { %1843 = vmatprep.subr.bf16.mxu0 %v2937_v60  ;;  %1929 = vmatprep.subr.bf16.mxu1 %v2939_v61  ;;  %v228_v60 = vld [vmem:[#allocation2 + $0x5b8] sm:$0xff]  ;;  %v2992_v61 = vcombine.low %v215_v48, %v219_v49  ;;  %v3001_v63 = vcombine.high %v223_v57, %v227_v58  ;;  %v279_v49 = vld [vmem:[#allocation2 + $0x750] sm:$0xff] }
  0xcd   :  { %v3003_v0 = vcombine.high %v224_v59, %v228_v60  ;;  %v3002_v6 = vcombine.low %v224_v59, %v228_v60  ;;  %v291_v59 = vld [vmem:[#allocation2 + $0x7b0] sm:$0xff]  ;;  %v288_v60 = vld [vmem:[#allocation2 + $0x798] sm:$0xff] }
  0xcf   :  { %1844 = vmatpush1.bf16.msra.mxu0 %v2936_v2  ;;  %1930 = vmatpush1.bf16.msra.mxu1 %v2938_v3  ;;  %v235_v2 = vld [vmem:[#allocation2 + $0x5f0] sm:$0xff]  ;;  %v232_v3 = vld [vmem:[#allocation2 + $0x5d8] sm:$0xff] }
  0xd0   :  { %1845 = vmatprep.subr.bf16.mxu0 %v2945_v4  ;;  %1931 = vmatprep.subr.bf16.mxu1 %v2947_v5  ;;  %v236_v4 = vld [vmem:[#allocation2 + $0x5f8] sm:$0xff]  ;;  %v3000_v5 = vcombine.low %v223_v57, %v227_v58  ;;  %v3009_v7 = vcombine.high %v231_v1, %v235_v2  ;;  %v287_v58 = vld [vmem:[#allocation2 + $0x790] sm:$0xff] }
  0xd1   :  { %v3011_v8 = vcombine.high %v232_v3, %v236_v4  ;;  %v3010_v15 = vcombine.low %v232_v3, %v236_v4  ;;  %v299_v3 = vld [vmem:[#allocation2 + $0x7f0] sm:$0xff]  ;;  %v296_v4 = vld [vmem:[#allocation2 + $0x7d8] sm:$0xff] }
  0xd3   :  { %1846 = vmatpush1.bf16.msra.mxu0 %v2944_v11  ;;  %1932 = vmatpush1.bf16.msra.mxu1 %v2946_v12  ;;  %v243_v11 = vld [vmem:[#allocation2 + $0x630] sm:$0xff]  ;;  %v240_v12 = vld [vmem:[#allocation2 + $0x618] sm:$0xff] }
  0xd4   :  { %1858 = vmatprep.subr.bf16.mxu0 %v2953_v13  ;;  %1944 = vmatprep.subr.bf16.mxu1 %v2955_v14  ;;  %v244_v13 = vld [vmem:[#allocation2 + $0x638] sm:$0xff]  ;;  %v3008_v14 = vcombine.low %v231_v1, %v235_v2  ;;  %v3017_v16 = vcombine.high %v239_v9, %v243_v11  ;;  %v295_v2 = vld [vmem:[#allocation2 + $0x7d0] sm:$0xff] }
  0xd5   :  { %v3019_v17 = vcombine.high %v240_v12, %v244_v13  ;;  %v3018_v23 = vcombine.low %v240_v12, %v244_v13  ;;  %v3310_v13 = vld [vmem:[%s3758_s3 + $0x40] sm:$0xff]  }
  0xd6   :  { %1848 = vmatmul.mubr.bf16.vlgmr.msra.gmra.mrb[4].mxu0 %v3382_v25  ;;  %1934 = vmatmul.mubr.bf16.vlgmr.msra.gmra.mrb[4].mxu1 %v3382_v25 }
  0xd7   :  { %1859 = vmatpush1.bf16.msra.mxu0 %v2952_v19  ;;  %1945 = vmatpush1.bf16.msra.mxu1 %v2954_v20  ;;  %v251_v19 = vld [vmem:[#allocation2 + $0x670] sm:$0xff]  ;;  %v248_v20 = vld [vmem:[#allocation2 + $0x658] sm:$0xff] }
  0xd8   :  { %1860 = vmatprep.subr.bf16.mxu0 %v2961_v21  ;;  %1946 = vmatprep.subr.bf16.mxu1 %v2963_v22  ;;  %v252_v21 = vld [vmem:[#allocation2 + $0x678] sm:$0xff]  ;;  %v3016_v22 = vcombine.low %v239_v9, %v243_v11  ;;  %v3025_v24 = vcombine.high %v247_v18, %v251_v19  ;;  %v3072_v11 = vcombine.low %v295_v2, %v299_v3 }
  0xd9   :  { %1890 = vmatprep.mubr.bf16.mxu0 %v3383_v34  ;;  %1976 = vmatprep.mubr.bf16.mxu1 %v3383_v34  ;;  %v3027_v25 = vcombine.high %v248_v20, %v252_v21  ;;  %v263_v34 = vld [vmem:[#allocation2 + $0x6d0] sm:$0xff] }
  0xdb   :  { %1861 = vmatpush1.bf16.msra.mxu0 %v2960_v28  ;;  %1947 = vmatpush1.bf16.msra.mxu1 %v2962_v29  ;;  %v256_v28 = vld [vmem:[#allocation2 + $0x698] sm:$0xff] }
  0xdc   :  { %1862 = vmatprep.subr.bf16.mxu0 %v2969_v30  ;;  %1948 = vmatprep.subr.bf16.mxu1 %v2971_v31  ;;  %v260_v29 = vld [vmem:[#allocation2 + $0x6b8] sm:$0xff]  ;;  %v3024_v30 = vcombine.low %v247_v18, %v251_v19  ;;  %v3026_v31 = vcombine.low %v248_v20, %v252_v21  ;;  %v3315_v18 = vld [vmem:[%s3758_s3 + $0xc8] sm:$0xff]   ;;  %v3318_v21 = vld [vmem:[%s3758_s3 + $0x50] sm:$0xff]  }
  0xdd   :  { %v3035_v33 = vcombine.high %v256_v28, %v260_v29  ;;  %v3316_v19 = vld [vmem:[%s3758_s3 + $0x8] sm:$0xff]  }
  0xde   :  { %v3317_v20 = vld [vmem:[%s3758_s3 + $0x88] sm:$0xff]  }
  0xdf   :  { %1863 = vmatpush1.bf16.msra.mxu0 %v2968_v37  ;;  %1949 = vmatpush1.bf16.msra.mxu1 %v2970_v38  ;;  %v268_v37 = vld [vmem:[#allocation2 + $0x6f8] sm:$0xff]  ;;  %v3032_v38 = vcombine.low %v255_v26, %v259_v27 }
  0xe0   :  { %1864 = vmatprep.subr.bf16.mxu0 %v2977_v39  ;;  %1950 = vmatprep.subr.bf16.mxu1 %v2979_v40  ;;  %v3034_v39 = vcombine.low %v256_v28, %v260_v29  ;;  %v3041_v40 = vcombine.high %v263_v34, %v267_v35  ;;  %v3043_v41 = vcombine.high %v264_v36, %v268_v37  ;;  %v3324_v26 = vld [vmem:[%s3758_s3 + $0x18] sm:$0xff]   ;;  %v3326_v28 = vld [vmem:[%s3758_s3 + $0x60] sm:$0xff]  }
  0xe1   :  { %v3325_v27 = vld [vmem:[%s3758_s3 + $0x98] sm:$0xff]   ;;  %v3327_v29 = vld [vmem:[%s3758_s3 + $0xe0] sm:$0xff]  }
  0xe3   :  { %1865 = vmatpush1.bf16.msra.mxu0 %v2976_v44  ;;  %1951 = vmatpush1.bf16.msra.mxu1 %v2978_v45  ;;  %v276_v44 = vld [vmem:[#allocation2 + $0x738] sm:$0xff]  ;;  %v3040_v45 = vcombine.low %v263_v34, %v267_v35  ;;  %v3332_v34 = vld [vmem:[%s3758_s3 + $0x28] sm:$0xff]  }
  0xe4   :  { %1866 = vmatprep.subr.bf16.mxu0 %v2985_v46  ;;  %1952 = vmatprep.subr.bf16.mxu1 %v2987_v47  ;;  %v3042_v46 = vcombine.low %v264_v36, %v268_v37  ;;  %v3049_v47 = vcombine.high %v271_v42, %v275_v43  ;;  %v3051_v48 = vcombine.high %v272_v56, %v276_v44  ;;  %v3333_v35 = vld [vmem:[%s3758_s3 + $0xa8] sm:$0xff]   ;;  %v3334_v36 = vld [vmem:[%s3758_s3 + $0x70] sm:$0xff]  }
  0xe5   :  { %v3335_v37 = vld [vmem:[%s3758_s3 + $0xf0] sm:$0xff]  }
  0xe7   :  { %1867 = vmatpush1.bf16.msra.mxu0 %v2984_v52  ;;  %1953 = vmatpush1.bf16.msra.mxu1 %v2986_v53  ;;  %v284_v52 = vld [vmem:[#allocation2 + $0x778] sm:$0xff]  ;;  %v3048_v53 = vcombine.low %v271_v42, %v275_v43 }
  0xe8   :  { %1868 = vmatprep.subr.bf16.mxu0 %v2993_v54  ;;  %1954 = vmatprep.subr.bf16.mxu1 %v2995_v55  ;;  %v3050_v54 = vcombine.low %v272_v56, %v276_v44  ;;  %v3057_v55 = vcombine.high %v279_v49, %v283_v50  ;;  %v3059_v57 = vcombine.high %v280_v51, %v284_v52  ;;  %v3340_v42 = vld [vmem:[%s3758_s3 + $0x38] sm:$0xff]   ;;  %v3342_v56 = vld [vmem:[%s3758_s3 + $0x140] sm:$0xff]  }
  0xe9   :  { %v3341_v43 = vld [vmem:[%s3758_s3 + $0xb8] sm:$0xff]   ;;  %v3343_v44 = vld [vmem:[%s3758_s3 + $0x1c0] sm:$0xff]  }
  0xeb   :  { %1869 = vmatpush1.bf16.msra.mxu0 %v2992_v61  ;;  %1955 = vmatpush1.bf16.msra.mxu1 %v2994_v62  ;;  %v292_v61 = vld [vmem:[#allocation2 + $0x7b8] sm:$0xff]  ;;  %v3056_v62 = vcombine.low %v279_v49, %v283_v50 }
  0xec   :  { %1870 = vmatprep.subr.bf16.mxu0 %v3001_v63  ;;  %1956 = vmatprep.subr.bf16.mxu1 %v3003_v0  ;;  %v3058_v63 = vcombine.low %v280_v51, %v284_v52  ;;  %v3065_v0 = vcombine.high %v287_v58, %v291_v59  ;;  %v3067_v1 = vcombine.high %v288_v60, %v292_v61 }
  0xef   :  { %1871 = vmatpush1.bf16.msra.mxu0 %v3000_v5  ;;  %1957 = vmatpush1.bf16.msra.mxu1 %v3002_v6  ;;  %v300_v5 = vld [vmem:[#allocation2 + $0x7f8] sm:$0xff]  ;;  %v3064_v6 = vcombine.low %v287_v58, %v291_v59 }
  0xf0   :  { %1872 = vmatprep.subr.bf16.mxu0 %v3009_v7  ;;  %1958 = vmatprep.subr.bf16.mxu1 %v3011_v8  ;;  %v3066_v7 = vcombine.low %v288_v60, %v292_v61  ;;  %v3073_v8 = vcombine.high %v295_v2, %v299_v3  ;;  %v3075_v9 = vcombine.high %v296_v4, %v300_v5 }
  0xf1   :  { %v3074_v12 = vcombine.low %v296_v4, %v300_v5 }
  0xf3   :  { %1873 = vmatpush1.bf16.msra.mxu0 %v3008_v14  ;;  %1959 = vmatpush1.bf16.msra.mxu1 %v3010_v15  ;;  %v3311_v14 = vld [vmem:[%s3758_s3 + $0xc0] sm:$0xff]  }
  0xf4   :  { %1874 = vmatprep.subr.bf16.mxu0 %v3017_v16  ;;  %1960 = vmatprep.subr.bf16.mxu1 %v3019_v17  ;;  %v3312_v15 = vld [vmem:[%s3758_s3] sm:$0xff]   ;;  %v3314_v17 = vld [vmem:[%s3758_s3 + $0x48] sm:$0xff]  }
  0xf5   :  { %v3313_v16 = vld [vmem:[%s3758_s3 + $0x80] sm:$0xff]  }
  0xf7   :  { %1875 = vmatpush1.bf16.msra.mxu0 %v3016_v22  ;;  %1961 = vmatpush1.bf16.msra.mxu1 %v3018_v23  ;;  %v3320_v22 = vld [vmem:[%s3758_s3 + $0x10] sm:$0xff]  }
  0xf8   :  { %1876 = vmatprep.subr.bf16.mxu0 %v3025_v24  ;;  %1962 = vmatprep.subr.bf16.mxu1 %v3027_v25  ;;  %v3321_v23 = vld [vmem:[%s3758_s3 + $0x90] sm:$0xff]   ;;  %v3322_v24 = vld [vmem:[%s3758_s3 + $0x58] sm:$0xff]  }
  0xf9   :  { %v3323_v25 = vld [vmem:[%s3758_s3 + $0xd8] sm:$0xff]  }
  0xfb   :  { %1877 = vmatpush1.bf16.msra.mxu0 %v3024_v30  ;;  %1963 = vmatpush1.bf16.msra.mxu1 %v3026_v31  ;;  %v3328_v30 = vld [vmem:[%s3758_s3 + $0x20] sm:$0xff]  }
  0xfc   :  { %1878 = vmatprep.subr.bf16.mxu0 %v3033_v32  ;;  %1964 = vmatprep.subr.bf16.mxu1 %v3035_v33  ;;  %v3329_v31 = vld [vmem:[%s3758_s3 + $0xa0] sm:$0xff]   ;;  %v3330_v32 = vld [vmem:[%s3758_s3 + $0x68] sm:$0xff]  }
  0xfd   :  { %v3331_v33 = vld [vmem:[%s3758_s3 + $0xe8] sm:$0xff]  }
  0xff   :  { %1879 = vmatpush1.bf16.msra.mxu0 %v3032_v38  ;;  %1965 = vmatpush1.bf16.msra.mxu1 %v3034_v39  ;;  %v3336_v38 = vld [vmem:[%s3758_s3 + $0x30] sm:$0xff]  }
 0x100   :  { %1880 = vmatprep.subr.bf16.mxu0 %v3041_v40  ;;  %1966 = vmatprep.subr.bf16.mxu1 %v3043_v41  ;;  %v3337_v39 = vld [vmem:[%s3758_s3 + $0xb0] sm:$0xff]   ;;  %v3338_v40 = vld [vmem:[%s3758_s3 + $0x78] sm:$0xff]  }
 0x101   :  { %v3339_v41 = vld [vmem:[%s3758_s3 + $0xf8] sm:$0xff]  }
 0x103   :  { %1881 = vmatpush1.bf16.msra.mxu0 %v3040_v45  ;;  %1967 = vmatpush1.bf16.msra.mxu1 %v3042_v46  ;;  %v303_v45 = vlaneseq }
 0x104   :  { %1882 = vmatprep.subr.bf16.mxu0 %v3049_v47  ;;  %1968 = vmatprep.subr.bf16.mxu1 %v3051_v48  ;;  %v3603_v48 = vld [vmem:[%s3757_s2] sm:$0xff] }
 0x105   :  { %v3597_v46 = vshrl.u32 %v303_v45, 7  ;;  %v3369_v45 = vld [vmem:[%s3758_s3 + $0x1b0] sm:$0xff]  }
 0x107   :  { %1883 = vmatpush1.bf16.msra.mxu0 %v3048_v53  ;;  %1969 = vmatpush1.bf16.msra.mxu1 %v3050_v54  ;;  %v305_v47 = vsub.s32 0, %v3597_v46  ;;  %v313_v49 = vsub.s32 2, %v3597_v46  ;;  %v309_v50 = vsub.s32 1, %v3597_v46  ;;  %v317_v51 = vsub.s32 3, %v3597_v46 }
 0x108   :  { %1884 = vmatprep.subr.bf16.mxu0 %v3057_v55  ;;  %1970 = vmatprep.subr.bf16.mxu1 %v3059_v57 }
 0x109   :  { %v306_v52 = vrot.slane %v3603_v48, %v305_v47  ;;  %v314_v53 = vrot.slane %v3603_v48, %v313_v49  ;;  %v310_v54 = vrot.slane %v3603_v48, %v309_v50  ;;  %v318_v55 = vrot.slane %v3603_v48, %v317_v51  ;;  %v3370_v47 = vld [vmem:[%s3758_s3 + $0x178] sm:$0xff]  }
 0x10a   :  { %v3371_v49 = vld [vmem:[%s3758_s3 + $0x1f8] sm:$0xff]  }
 0x10b   :  { %1885 = vmatpush1.bf16.msra.mxu0 %v3056_v62  ;;  %1971 = vmatpush1.bf16.msra.mxu1 %v3058_v63  ;;  %v3372_v50 = vld [vmem:[%s3758_s3 + $0x138] sm:$0xff]  }
 0x10c   :  { %1886 = vmatprep.subr.bf16.mxu0 %v3065_v0  ;;  %1972 = vmatprep.subr.bf16.mxu1 %v3067_v1  ;;  %v3373_v51 = vld [vmem:[%s3758_s3 + $0x1b8] sm:$0xff]  }
 0x10f   :  { %1887 = vmatpush1.bf16.msra.mxu0 %v3064_v6  ;;  %1973 = vmatpush1.bf16.msra.mxu1 %v3066_v7 }
 0x110   :  { %1888 = vmatprep.subr.bf16.mxu0 %v3073_v8  ;;  %1974 = vmatprep.subr.bf16.mxu1 %v3075_v9 }
 0x113   :  { %1889 = vmatpush1.bf16.msra.mxu0 %v3072_v11  ;;  %1975 = vmatpush1.bf16.msra.mxu1 %v3074_v12 }
 0x114   :  { %3150 = vmatprep.subr.bf16.mxu0 %v3310_v13  ;;  %3172 = vmatprep.subr.bf16.mxu1 %v3311_v14 }
 0x116   :  { %1891 = vmatmul.mubr.bf16.vlgmr.msra.gmra.mrb[4].mxu0 %v3481_v10  ;;  %1977 = vmatmul.mubr.bf16.vlgmr.msra.gmra.mrb[4].mxu1 %v3481_v10  ;;  %v3319_v10 = vld [vmem:[%s3758_s3 + $0xd0] sm:$0xff]  }
 0x117   :  { %3151 = vmatpush3.bf16.msra.mxu0 %v3312_v15  ;;  %3173 = vmatpush3.bf16.msra.mxu1 %v3313_v16 }
 0x118   :  { %3152 = vmatprep.subr.bf16.mxu0 %v3314_v17  ;;  %3174 = vmatprep.subr.bf16.mxu1 %v3315_v18 }
 0x11b   :  { %3153 = vmatpush3.bf16.msra.mxu0 %v3316_v19  ;;  %3175 = vmatpush3.bf16.msra.mxu1 %v3317_v20 }
 0x11c   :  { %3154 = vmatprep.subr.bf16.mxu0 %v3318_v21  ;;  %3176 = vmatprep.subr.bf16.mxu1 %v3319_v10  ;;  %v3344_v21 = vld [vmem:[%s3758_s3 + $0x100] sm:$0xff]  }
 0x11f   :  { %3155 = vmatpush3.bf16.msra.mxu0 %v3320_v22  ;;  %3177 = vmatpush3.bf16.msra.mxu1 %v3321_v23  ;;  %v3345_v22 = vld [vmem:[%s3758_s3 + $0x180] sm:$0xff]   ;;  %v3346_v23 = vld [vmem:[%s3758_s3 + $0x148] sm:$0xff]  }
 0x120   :  { %3156 = vmatprep.subr.bf16.mxu0 %v3322_v24  ;;  %3178 = vmatprep.subr.bf16.mxu1 %v3323_v25  ;;  %v3347_v24 = vld [vmem:[%s3758_s3 + $0x1c8] sm:$0xff]  }
 0x121   :  { %v3348_v25 = vld [vmem:[%s3758_s3 + $0x108] sm:$0xff]  }
 0x123   :  { %3157 = vmatpush3.bf16.msra.mxu0 %v3324_v26  ;;  %3179 = vmatpush3.bf16.msra.mxu1 %v3325_v27  ;;  %v3349_v26 = vld [vmem:[%s3758_s3 + $0x188] sm:$0xff]   ;;  %v3350_v27 = vld [vmem:[%s3758_s3 + $0x150] sm:$0xff]  }
 0x124   :  { %3158 = vmatprep.subr.bf16.mxu0 %v3326_v28  ;;  %3180 = vmatprep.subr.bf16.mxu1 %v3327_v29  ;;  %v3351_v28 = vld [vmem:[%s3758_s3 + $0x1d0] sm:$0xff]  }
 0x125   :  { %v3352_v29 = vld [vmem:[%s3758_s3 + $0x110] sm:$0xff]  }
 0x127   :  { %3159 = vmatpush3.bf16.msra.mxu0 %v3328_v30  ;;  %3181 = vmatpush3.bf16.msra.mxu1 %v3329_v31  ;;  %v3353_v30 = vld [vmem:[%s3758_s3 + $0x190] sm:$0xff]   ;;  %v3354_v31 = vld [vmem:[%s3758_s3 + $0x158] sm:$0xff]  }
 0x128   :  { %3160 = vmatprep.subr.bf16.mxu0 %v3330_v32  ;;  %3182 = vmatprep.subr.bf16.mxu1 %v3331_v33  ;;  %v3355_v32 = vld [vmem:[%s3758_s3 + $0x1d8] sm:$0xff]  }
 0x129   :  { %v3356_v33 = vld [vmem:[%s3758_s3 + $0x118] sm:$0xff]  }
 0x12b   :  { %3161 = vmatpush3.bf16.msra.mxu0 %v3332_v34  ;;  %3183 = vmatpush3.bf16.msra.mxu1 %v3333_v35  ;;  %v3357_v34 = vld [vmem:[%s3758_s3 + $0x198] sm:$0xff]   ;;  %v3358_v35 = vld [vmem:[%s3758_s3 + $0x160] sm:$0xff]  }
 0x12c   :  { %3162 = vmatprep.subr.bf16.mxu0 %v3334_v36  ;;  %3184 = vmatprep.subr.bf16.mxu1 %v3335_v37  ;;  %v3359_v36 = vld [vmem:[%s3758_s3 + $0x1e0] sm:$0xff]  }
 0x12d   :  { %v3360_v37 = vld [vmem:[%s3758_s3 + $0x120] sm:$0xff]  }
 0x12f   :  { %3163 = vmatpush3.bf16.msra.mxu0 %v3336_v38  ;;  %3185 = vmatpush3.bf16.msra.mxu1 %v3337_v39  ;;  %v3361_v38 = vld [vmem:[%s3758_s3 + $0x1a0] sm:$0xff]   ;;  %v3362_v39 = vld [vmem:[%s3758_s3 + $0x168] sm:$0xff]  }
 0x130   :  { %3164 = vmatprep.subr.bf16.mxu0 %v3338_v40  ;;  %3186 = vmatprep.subr.bf16.mxu1 %v3339_v41  ;;  %v3363_v40 = vld [vmem:[%s3758_s3 + $0x1e8] sm:$0xff]  }
 0x131   :  { %v3364_v41 = vld [vmem:[%s3758_s3 + $0x128] sm:$0xff]  }
 0x133   :  { %3165 = vmatpush3.bf16.msra.mxu0 %v3340_v42  ;;  %3187 = vmatpush3.bf16.msra.mxu1 %v3341_v43  ;;  %v3365_v42 = vld [vmem:[%s3758_s3 + $0x1a8] sm:$0xff]   ;;  %v3366_v43 = vld [vmem:[%s3758_s3 + $0x170] sm:$0xff]  }
 0x134   :  { %3194 = vmatprep.subr.bf16.mxu0 %v3342_v56  ;;  %3216 = vmatprep.subr.bf16.mxu1 %v3343_v44  ;;  %v3367_v56 = vld [vmem:[%s3758_s3 + $0x1f0] sm:$0xff]  }
 0x135   :  { %v3368_v44 = vld [vmem:[%s3758_s3 + $0x130] sm:$0xff]  }
 0x169   :  { %v1720_v57 = vpop.f32.mrb[0].mxu0  ;;  %v1806_v59 = vpop.f32.mrb[0].mxu1 }
 0x16a   :  { %v3267_v58 = vadd.f32 %v1720_v57, %v306_v52  ;;  %v1722_v60 = vpop.f32.mrb[1].mxu0  ;;  %v3271_v61 = vadd.f32 %v1806_v59, %v314_v53  ;;  %v1808_v63 = vpop.f32.mrb[1].mxu1  ;;  %v333_v57 = vsub.s32 7, %v3597_v46 }
 0x16b   :  { %v3268_v62 = vadd.f32 %v1722_v60, %v310_v54  ;;  %v1724_v0 = vpop.f32.mrb[2].mxu0  ;;  %v3272_v1 = vadd.f32 %v1808_v63, %v318_v55  ;;  %v1810_v3 = vpop.f32.mrb[2].mxu1 }
 0x16c   :  { %v3269_v2 = vadd.f32 %v1724_v0, %v306_v52  ;;  %v1726_v4 = vpop.f32.mrb[3].mxu0  ;;  %v3273_v5 = vadd.f32 %v1810_v3, %v314_v53  ;;  %v1812_v7 = vpop.f32.mrb[3].mxu1  ;;  %v1987_v8 = vmax.f32 %v3267_v58, 0.0  ;;  %v1989_v12 = vmax.f32 %v3271_v61, 0.0 }
 0x16d   :  { %v3270_v6 = vadd.f32 %v1726_v4, %v310_v54  ;;  %v3274_v11 = vadd.f32 %v1812_v7, %v318_v55  ;;  %v1988_v13 = vmax.f32 %v3268_v62, 0.0  ;;  %v1990_v16 = vmax.f32 %v3272_v1, 0.0 }
 0x16e   :  { %v1995_v9 = vmax.f32 %v3269_v2, 0.0  ;;  %v1997_v14 = vmax.f32 %v3273_v5, 0.0  ;;  %v3411_v52 = vmov 0.0   ;;  %v321_v53 = vsub.s32 4, %v3597_v46 }
 0x16f   :  { %v1996_v15 = vmax.f32 %v3270_v6, 0.0  ;;  %v1998_v18 = vmax.f32 %v3274_v11, 0.0  ;;  %v329_v54 = vsub.s32 6, %v3597_v46  ;;  %v325_v55 = vsub.s32 5, %v3597_v46 }
 0x170   :  { %v2003_v17 = vpack.c.bf16 %v1995_v9, %v1987_v8  ;;  %v2005_v19 = vpack.c.bf16 %v1997_v14, %v1989_v12  ;;  %v322_v58 = vrot.slane %v3603_v48, %v321_v53  ;;  %v334_v61 = vrot.slane %v3603_v48, %v333_v57 }
 0x171   :  { %v2004_v20 = vpack.c.bf16 %v1996_v15, %v1988_v13  ;;  %v2006_v10 = vpack.c.bf16 %v1998_v18, %v1990_v16  ;;  %v330_v59 = vrot.slane %v3603_v48, %v329_v54  ;;  %v326_v60 = vrot.slane %v3603_v48, %v325_v55 }
 0x173   :  { %2562 = vmatprep.mubr.bf16.mxu0 %v2004_v20  ;;  %2603 = vmatprep.mubr.bf16.mxu1 %v2006_v10 }
 0x174   :  { %2563 = vmatmul.mubr.bf16.vlgmr.msra.gmra.mrb[8].mxu0 %v2003_v17  ;;  %2604 = vmatmul.mubr.bf16.vlgmr.msra.gmra.mrb[8].mxu1 %v2005_v19 }
 0x175   :  { %3195 = vmatpush3.bf16.msra.mxu0 %v3344_v21  ;;  %3217 = vmatpush3.bf16.msra.mxu1 %v3345_v22 }
 0x176   :  { %3196 = vmatprep.subr.bf16.mxu0 %v3346_v23  ;;  %3218 = vmatprep.subr.bf16.mxu1 %v3347_v24  ;;  %v3374_v23 = vld [vmem:[%s3760_s5] sm:$0xff]  }
 0x179   :  { %3197 = vmatpush3.bf16.msra.mxu0 %v3348_v25  ;;  %3219 = vmatpush3.bf16.msra.mxu1 %v3349_v26  ;;  %v3375_v25 = vld [vmem:[%s3760_s5 + $0x8] sm:$0xff]   ;;  %v3376_v26 = vld [vmem:[%s3760_s5 + $0x10] sm:$0xff]  }
 0x17a   :  { %3198 = vmatprep.subr.bf16.mxu0 %v3350_v27  ;;  %3220 = vmatprep.subr.bf16.mxu1 %v3351_v28  ;;  %v3377_v27 = vld [vmem:[%s3760_s5 + $0x18] sm:$0xff]   ;;  %v3378_v28 = vld [vmem:[%s3760_s5 + $0x20] sm:$0xff]  }
 0x17d   :  { %3199 = vmatpush3.bf16.msra.mxu0 %v3352_v29  ;;  %3221 = vmatpush3.bf16.msra.mxu1 %v3353_v30 }
 0x17e   :  { %3200 = vmatprep.subr.bf16.mxu0 %v3354_v31  ;;  %3222 = vmatprep.subr.bf16.mxu1 %v3355_v32  ;;  %v3076_v31 = vld [vmem:[%s3759_s4] ss:$0 sm:$0xff] }
 0x181   :  { %3201 = vmatpush3.bf16.msra.mxu0 %v3356_v33  ;;  %3223 = vmatpush3.bf16.msra.mxu1 %v3357_v34 }
 0x182   :  { %3202 = vmatprep.subr.bf16.mxu0 %v3358_v35  ;;  %3224 = vmatprep.subr.bf16.mxu1 %v3359_v36  ;;  %v3379_v36 = vld [vmem:[%s3760_s5 + $0x28] sm:$0xff]  }
 0x185   :  { %3203 = vmatpush3.bf16.msra.mxu0 %v3360_v37  ;;  %3225 = vmatpush3.bf16.msra.mxu1 %v3361_v38 }
 0x186   :  { %3204 = vmatprep.subr.bf16.mxu0 %v3362_v39  ;;  %3226 = vmatprep.subr.bf16.mxu1 %v3363_v40 }
 0x189   :  { %3205 = vmatpush3.bf16.msra.mxu0 %v3364_v41  ;;  %3227 = vmatpush3.bf16.msra.mxu1 %v3365_v42 }
 0x18a   :  { %3206 = vmatprep.subr.bf16.mxu0 %v3366_v43  ;;  %3228 = vmatprep.subr.bf16.mxu1 %v3367_v56 }
 0x18d   :  { %3207 = vmatpush3.bf16.msra.mxu0 %v3368_v44  ;;  %3229 = vmatpush3.bf16.msra.mxu1 %v3369_v45  ;;  %v3380_v45 = vld [vmem:[%s3760_s5 + $0x30] sm:$0xff]  }
 0x18e   :  { %3208 = vmatprep.subr.bf16.mxu0 %v3370_v47  ;;  %3230 = vmatprep.subr.bf16.mxu1 %v3371_v49  ;;  %v3381_v49 = vld [vmem:[%s3760_s5 + $0x38] sm:$0xff]  }
 0x191   :  { %3209 = vmatpush3.bf16.msra.mxu0 %v3372_v50  ;;  %3231 = vmatpush3.bf16.msra.mxu1 %v3373_v51 }
 0x192   :  { %3247 = vmatprep.subr.bf16.mxu0 %v3411_v52 }
 0x1e9   :  { %v1892_v62 = vpop.f32.mrb[4].mxu0  ;;  %v1978_v0 = vpop.f32.mrb[4].mxu1 }
 0x1ea   :  { %v3275_v63 = vadd.f32 %v1892_v62, %v322_v58  ;;  %v1894_v1 = vpop.f32.mrb[5].mxu0  ;;  %v3279_v2 = vadd.f32 %v1978_v0, %v330_v59  ;;  %v1980_v4 = vpop.f32.mrb[5].mxu1 }
 0x1eb   :  { %v3276_v3 = vadd.f32 %v1894_v1, %v326_v60  ;;  %v1896_v5 = vpop.f32.mrb[6].mxu0  ;;  %v3280_v6 = vadd.f32 %v1980_v4, %v334_v61  ;;  %v1982_v8 = vpop.f32.mrb[6].mxu1 }
 0x1ec   :  { %v3277_v7 = vadd.f32 %v1896_v5, %v322_v58  ;;  %v1898_v46 = vpop.f32.mrb[7].mxu0  ;;  %v3281_v9 = vadd.f32 %v1982_v8, %v330_v59  ;;  %v1984_v12 = vpop.f32.mrb[7].mxu1  ;;  %v1991_v13 = vmax.f32 %v3275_v63, 0.0  ;;  %v1993_v16 = vmax.f32 %v3279_v2, 0.0 }
 0x1ed   :  { %v3278_v11 = vadd.f32 %v1898_v46, %v326_v60  ;;  %v3282_v15 = vadd.f32 %v1984_v12, %v334_v61  ;;  %v1992_v48 = vmax.f32 %v3276_v3, 0.0  ;;  %v1994_v19 = vmax.f32 %v3280_v6, 0.0 }
 0x1ee   :  { %v1999_v14 = vmax.f32 %v3277_v7, 0.0  ;;  %v2001_v17 = vmax.f32 %v3281_v9, 0.0 }
 0x1ef   :  { %v2000_v18 = vmax.f32 %v3278_v11, 0.0  ;;  %v2002_v21 = vmax.f32 %v3282_v15, 0.0 }
 0x1f0   :  { %v2007_v20 = vpack.c.bf16 %v1999_v14, %v1991_v13  ;;  %v2009_v10 = vpack.c.bf16 %v2001_v17, %v1993_v16 }
 0x1f1   :  { %v2008_v22 = vpack.c.bf16 %v2000_v18, %v1992_v48  ;;  %v2010_v24 = vpack.c.bf16 %v2002_v21, %v1994_v19 }
 0x1f3   :  { %2644 = vmatprep.mubr.bf16.mxu0 %v2008_v22  ;;  %2685 = vmatprep.mubr.bf16.mxu1 %v2010_v24 }
 0x1f4   :  { %2645 = vmatmul.mubr.bf16.vlgmr.msra.gmra.mrb[12].mxu0 %v2007_v20  ;;  %2686 = vmatmul.mubr.bf16.vlgmr.msra.gmra.mrb[12].mxu1 %v2009_v10 }
 0x1f5   :  { %3248 = vmatpush3.bf16.msra.mxu0 %v3374_v23  ;;  %3263 = vmatprep.mubr.msk.bf16.mxu0 %vm3412_vm0, %v3411_v52 }
 0x1f6   :  { %3249 = vmatprep.subr.bf16.mxu0 %v3411_v52 }
 0x1f9   :  { %3250 = vmatpush3.bf16.msra.mxu0 %v3375_v25 }
 0x1fa   :  { %3251 = vmatprep.subr.bf16.mxu0 %v3411_v52 }
 0x1fd   :  { %3252 = vmatpush3.bf16.msra.mxu0 %v3376_v26 }
 0x1fe   :  { %3253 = vmatprep.subr.bf16.mxu0 %v3411_v52 }
 0x201   :  { %3254 = vmatpush3.bf16.msra.mxu0 %v3377_v27 }
 0x202   :  { %3255 = vmatprep.subr.bf16.mxu0 %v3411_v52 }
 0x205   :  { %3256 = vmatpush3.bf16.msra.mxu0 %v3378_v28 }
 0x206   :  { %3257 = vmatprep.subr.bf16.mxu0 %v3411_v52 }
 0x209   :  { %3258 = vmatpush3.bf16.msra.mxu0 %v3379_v36 }
 0x20a   :  { %3259 = vmatprep.subr.bf16.mxu0 %v3411_v52 }
 0x20d   :  { %3260 = vmatpush3.bf16.msra.mxu0 %v3380_v45 }
 0x20e   :  { %3261 = vmatprep.subr.bf16.mxu0 %v3411_v52  ;;  %v3141_v52 = vld [vmem:[%s3761_s6] ss:$0 sm:$0xff] }
 0x211   :  { %3262 = vmatpush3.bf16.msra.mxu0 %v3381_v49 }
 0x247   :  { %v3166_v29 = vpop.f32.mrb[8].mxu0  ;;  %v3188_v30 = vpop.f32.mrb[8].mxu1 }
 0x248   :  { %v3167_v32 = vpop.f32.mrb[9].mxu0  ;;  %v3189_v34 = vpop.f32.mrb[9].mxu1 }
 0x249   :  { %v3168_v33 = vadd.f32 %v3167_v32, %v3166_v29  ;;  %v3169_v35 = vpop.f32.mrb[10].mxu0  ;;  %v3190_v37 = vadd.f32 %v3189_v34, %v3188_v30  ;;  %v3191_v38 = vpop.f32.mrb[10].mxu1 }
 0x24a   :  { %v3170_v39 = vpop.f32.mrb[11].mxu0  ;;  %v3192_v42 = vpop.f32.mrb[11].mxu1 }
 0x24b   :  { %v2565_v40 = vadd.f32 %v3168_v33, %v3076_v31  ;;  %v3171_v41 = vadd.f32 %v3170_v39, %v3169_v35  ;;  %v3193_v43 = vadd.f32 %v3192_v42, %v3191_v38 }
 0x24d   :  { %v2606_v56 = vadd.f32 %v3190_v37, %v2565_v40  ;;  %v2568_v44 = vadd.f32 %v3171_v41, %v3076_v31 }
 0x24f   :  { %v2609_v47 = vadd.f32 %v3193_v43, %v2568_v44 }
 0x2c7   :  { %v3210_v50 = vpop.f32.mrb[12].mxu0  ;;  %v3232_v51 = vpop.f32.mrb[12].mxu1 }
 0x2c8   :  { %v3211_v53 = vpop.f32.mrb[13].mxu0  ;;  %v3233_v55 = vpop.f32.mrb[13].mxu1 }
 0x2c9   :  { %v3212_v54 = vadd.f32 %v3211_v53, %v3210_v50  ;;  %v3213_v57 = vpop.f32.mrb[14].mxu0  ;;  %v3234_v58 = vadd.f32 %v3233_v55, %v3232_v51  ;;  %v3235_v59 = vpop.f32.mrb[14].mxu1 }
 0x2ca   :  { %v3214_v60 = vpop.f32.mrb[15].mxu0  ;;  %v3236_v63 = vpop.f32.mrb[15].mxu1 }
 0x2cb   :  { %v2647_v61 = vadd.f32 %v3212_v54, %v2606_v56  ;;  %v3215_v62 = vadd.f32 %v3214_v60, %v3213_v57  ;;  %v3237_v0 = vadd.f32 %v3236_v63, %v3235_v59 }
 0x2cd   :  { %v2688_v1 = vadd.f32 %v3234_v58, %v2647_v61  ;;  %v2650_v2 = vadd.f32 %v3215_v62, %v2609_v47 }
 0x2cf   :  { %v2691_v3 = vadd.f32 %v3237_v0, %v2650_v2  ;;  %v2694_v4 = vmax.f32 %v2688_v1, 0.0 }
 0x2d1   :  { %v2695_v5 = vmax.f32 %v2691_v3, 0.0 }
 0x2d3   :  { %v2696_v6 = vpack.c.bf16 %v2695_v5, %v2694_v4 }
 0x2d5   :  { %3264 = vmatmul.mubr.bf16.vlgmr.msra.gmra.mrb[16].mxu0 %v2696_v6 }
 0x3a8   :  { %v2802_v7 = vpop.f32.mrb[16].mxu0 }
 0x3a9   :  { %v2803_v8 = vadd.f32 %v3141_v52, %v2802_v7  ;;  %v3265_v46 = vpop.f32.mrb[17].mxu0 }
 0x3aa   :  { %v2805_v9 = vpop.f32.mrb[18].mxu0 }
 0x3ab   :  { %2809 = vst [vmem:[%s3762_s7] sm:$0xff] %v2803_v8  ;;  %v2806_v11 = vadd.f32 %v3141_v52, %v2805_v9  ;;  %v3266_v12 = vpop.f32.mrb[19].mxu0 }
 0x3ad   :  { %2810 = vst [vmem:[%s3762_s7 + $0x8] sm:$0xff] %v2806_v11 }
 0x3ae   :  { %2815 = vsyncpa [#allocation3], 1 }

</bundles_post_ra>
